<compile_context>
chip_gen: v7x
topology: tpu7x:2x2x1
jax: 0.10.0
libtpu: 0.0.40
codegen_flags: <defaults>
</compile_context>

<pallas_src>
import jax
import jax.numpy as jnp
from jax.experimental import pallas as pl
from jax.experimental.pallas import tpu as pltpu


# ----------------------------------------------------------------------------
# Helpers
# ----------------------------------------------------------------------------
def _round_up(n, m):
    return ((n + m - 1) // m) * m


def _tpu_generation():
    """Best-effort TPU generation (5, 6, 7); defaults to 6 if unknown."""
    try:
        kind = jax.devices()[0].device_kind.lower()
    except Exception:
        return 6
    for gen in (7, 6, 5):
        if f"v{gen}" in kind:
            return gen
    return 6


def _vmem_capacity_bytes(gen):
    try:
        return int(pltpu.get_tpu_info().vmem_capacity_bytes)
    except Exception:
        # v5e/v6e: 128 MiB per core; v7x: 64 MiB per TensorCore.
        return (64 if gen >= 7 else 128) * 1024 * 1024


def _pad_feature(d, gen):
    """Pad a feature dim: 128-multiple; bump to >=256 on v6e/v7x (MXU fill)."""
    p = _round_up(d, 128)
    if gen >= 6 and p < 256:
        p = 256
    return p


def _pick_batch_tile(batch, default_tile):
    """Largest multiple of 128 that is <= default_tile and divides the
    128-rounded batch (avoids padding small batches to huge tiles)."""
    default_tile = max(128, default_tile)
    b128 = _round_up(batch, 128)
    if b128 <= default_tile:
        return b128
    nblocks = b128 // 128
    best = 128
    for blocks in range(1, nblocks + 1):
        tile = 128 * blocks
        if tile > default_tile:
            break
        if nblocks % blocks == 0:
            best = tile
    return best


def _vmem_footprint_bytes(tb, in_p, hid_p, out_p):
    """Rough VMEM footprint: bf16 weights (single-buffered), f32 biases,
    double-buffered bf16 x tile + f32 out tile, and h1/h2 intermediates."""
    weights = 2 * (in_p * hid_p + hid_p * hid_p + hid_p * out_p)    # bf16 x1
    biases = 4 * (2 * hid_p + out_p)                                # f32
    x_tiles = 2 * (tb * in_p * 2)                                   # bf16 x2
    out_tiles = 2 * (tb * out_p * 4)                                # f32  x2
    interm = 2 * (tb * hid_p * (4 + 2))                             # h1/h2 f32+bf16
    return weights + biases + x_tiles + out_tiles + interm


# ----------------------------------------------------------------------------
# Kernel
# ----------------------------------------------------------------------------
def mlp_kernel(x_ref, w1_ref, b1_ref, w2_ref, b2_ref, w3_ref, b3_ref, o_ref):
    """Fused 3-layer MLP forward on one (TB, in_p) batch tile.

    bf16 operands feed the MXU, accumulation stays f32 via
    preferred_element_type; bias add + ReLU run in f32 on the VPU and the
    intermediate is cast back to bf16 for the next MXU pass.  Output is
    stored f32 and lane-dense (out_p % 128 == 0)."""
    x = x_ref[...]

    # fc1 + ReLU
    h1 = jnp.dot(x, w1_ref[...], preferred_element_type=jnp.float32) + b1_ref[...]
    h1 = jnp.maximum(h1, 0.0).astype(jnp.bfloat16)

    # fc2 + ReLU
    h2 = jnp.dot(h1, w2_ref[...], preferred_element_type=jnp.float32) + b2_ref[...]
    h2 = jnp.maximum(h2, 0.0).astype(jnp.bfloat16)

    # fc3 (no activation)
    o = jnp.dot(h2, w3_ref[...], preferred_element_type=jnp.float32) + b3_ref[...]
    o_ref[...] = o.astype(o_ref.dtype)


# ----------------------------------------------------------------------------
# One-time parameter preparation (hoisted out of the hot path)
# ----------------------------------------------------------------------------
def prepare_mlp_params(w1_t, b1, w2_t, b2, w3_t, b3, *, gen=None):
    """Pad weights/biases to MXU-friendly shapes and cast weights to bf16
    ONCE; the result is reused by every mlp_forward call."""
    if gen is None:
        gen = _tpu_generation()

    in_dim, hid_dim = w1_t.shape
    out_dim = w3_t.shape[1]
    in_p = _pad_feature(in_dim, gen)
    hid_p = _pad_feature(hid_dim, gen)
    out_p = _pad_feature(out_dim, gen)

    def pad2(a, rows, cols):
        if a.shape == (rows, cols):
            return a
        return jnp.pad(a, ((0, rows - a.shape[0]), (0, cols - a.shape[1])))

    # Zero padding keeps the math exact: padded input columns hit zero weight
    # rows, padded weight columns produce zero outputs, ReLU(0) = 0.
    return dict(
        gen=gen,
        in_dim=in_dim, hid_dim=hid_dim, out_dim=out_dim,
        in_p=in_p, hid_p=hid_p, out_p=out_p,
        w1=pad2(w1_t, in_p, hid_p).astype(jnp.bfloat16),
        w2=pad2(w2_t, hid_p, hid_p).astype(jnp.bfloat16),
        w3=pad2(w3_t, hid_p, out_p).astype(jnp.bfloat16),
        b1=pad2(b1, 1, hid_p).astype(jnp.float32),
        b2=pad2(b2, 1, hid_p).astype(jnp.float32),
        b3=pad2(b3, 1, out_p).astype(jnp.float32),
    )


# ----------------------------------------------------------------------------
# Forward wrapper
# ----------------------------------------------------------------------------
def _call_pallas(x_p, params, batch_tile, B_p, out_dtype, vmem_limit,
                 single_buffer_weights):
    in_p, hid_p, out_p = params["in_p"], params["hid_p"], params["out_p"]
    grid = (B_p // batch_tile,)

    if single_buffer_weights:
        wmode = dict(pipeline_mode=pl.Buffered(1))
    else:
        wmode = {}

    flops = 2 * B_p * (in_p * hid_p + hid_p * hid_p + hid_p * out_p)
    bytes_accessed = (
        B_p * in_p * 2
        + (in_p * hid_p + hid_p * hid_p + hid_p * out_p) * 2
        + (2 * hid_p + out_p) * 4
        + B_p * out_p * 4
    )

    return pl.pallas_call(
        mlp_kernel,
        out_shape=jax.ShapeDtypeStruct((B_p, out_p), out_dtype),
        grid=grid,
        in_specs=[
            # x: one batch tile per grid step (double-buffered DMA pipeline).
            pl.BlockSpec((batch_tile, in_p), lambda i: (i, 0)),
            # Weights / biases: constant index_map -> VMEM-resident; single-
            # buffered so they don't pay 2x VMEM for a DMA that never repeats.
            pl.BlockSpec((in_p, hid_p), lambda i: (0, 0), **wmode),
            pl.BlockSpec((1, hid_p), lambda i: (0, 0), **wmode),
            pl.BlockSpec((hid_p, hid_p), lambda i: (0, 0), **wmode),
            pl.BlockSpec((1, hid_p), lambda i: (0, 0), **wmode),
            pl.BlockSpec((hid_p, out_p), lambda i: (0, 0), **wmode),
            pl.BlockSpec((1, out_p), lambda i: (0, 0), **wmode),
        ],
        out_specs=pl.BlockSpec((batch_tile, out_p), lambda i: (i, 0)),
        compiler_params=pltpu.CompilerParams(
            dimension_semantics=("parallel",),
            vmem_limit_bytes=vmem_limit,
        ),
        cost_estimate=pl.CostEstimate(
            flops=flops, transcendentals=0, bytes_accessed=bytes_accessed),
    )(x_p, params["w1"], params["b1"], params["w2"], params["b2"],
      params["w3"], params["b3"])


def mlp_forward(x, params, *, batch_tile=None, out_dtype=jnp.float32):
    """x: (B, input_size) f32; params: output of prepare_mlp_params.
    Returns (B, output_size) `out_dtype` (default f32, module semantics)."""
    gen = params["gen"]
    B, x_in = x.shape
    assert x_in == params["in_dim"]
    in_dim, out_dim = params["in_dim"], params["out_dim"]
    in_p, hid_p, out_p = params["in_p"], params["hid_p"], params["out_p"]

    # Generation-aware default tile: v5e MXU is 128-row native; v6e/v7x are
    # 256-row (bigger tiles amortize the ~0.35us per-step overhead), with v7x
    # held at 256 because of its smaller (64 MiB) VMEM.
    if batch_tile is None:
        batch_tile = {5: 128, 6: 512, 7: 256}.get(gen, 256)
    batch_tile = _pick_batch_tile(B, batch_tile)

    # Shrink the tile if the footprint would blow the VMEM budget.
    cap = _vmem_capacity_bytes(gen)
    budget = int(cap * 0.75)
    while (batch_tile > 128
           and _vmem_footprint_bytes(batch_tile, in_p, hid_p, out_p) > budget):
        batch_tile = _pick_batch_tile(B, batch_tile - 128)

    footprint = _vmem_footprint_bytes(batch_tile, in_p, hid_p, out_p)
    vmem_limit = int(min(cap, max(int(footprint * 1.5), 32 * 1024 * 1024)))

    B_p = _round_up(B, batch_tile)
    if x.shape == (B_p, in_p):
        x_p = x.astype(jnp.bfloat16)
    else:
        x_p = jnp.pad(x, ((0, B_p - B), (0, in_p - in_dim))).astype(jnp.bfloat16)

    try:
        out_padded = _call_pallas(x_p, params, batch_tile, B_p, out_dtype,
                                  vmem_limit, single_buffer_weights=True)
    except Exception:
        # TODO(synk): drop this fallback once pl.Buffered(1) single-buffering
        # is guaranteed available on the deployed jax version.
        out_padded = _call_pallas(x_p, params, batch_tile, B_p, out_dtype,
                                  vmem_limit, single_buffer_weights=False)

    return out_padded[:B, :out_dim]


# ----------------------------------------------------------------------------
# Parameter init (mimics torch.nn.Linear's U(-1/sqrt(in), 1/sqrt(in)))
# ----------------------------------------------------------------------------
def init_linear_params(key, in_features, out_features):
    kw, kb = jax.random.split(key)
    bound = 1.0 / jnp.sqrt(jnp.float32(in_features))
    # Stored pre-transposed: (in_features, out_features)
    w_t = jax.random.uniform(kw, (in_features, out_features), jnp.float32,
                             minval=-bound, maxval=bound)
    b = jax.random.uniform(kb, (1, out_features), jnp.float32,
                           minval=-bound, maxval=bound)
    return w_t, b


if __name__ == "__main__":
    # Small shapes consistent with the module's forward: (batch, input_size)
    batch = 2
    input_size = 32
    hidden_size = 32
    output_size = 16

    root = jax.random.PRNGKey(0)
    kx, k1, k2, k3 = jax.random.split(root, 4)

    x = 0.1 * jax.random.uniform(kx, (batch, input_size), jnp.float32)

    w1_t, b1 = init_linear_params(k1, input_size, hidden_size)
    w2_t, b2 = init_linear_params(k2, hidden_size, hidden_size)
    w3_t, b3 = init_linear_params(k3, hidden_size, output_size)

    # One-time prep (padding + bf16 cast hoisted out of the hot path).
    params = prepare_mlp_params(w1_t, b1, w2_t, b2, w3_t, b3)

    y = mlp_forward(x, params)
    y = jax.block_until_ready(y)
    assert y.shape == (batch, output_size)

    # Reference 1: emulate the kernel's bf16-operand / f32-accumulate math.
    xb = x.astype(jnp.bfloat16)
    w1b, w2b, w3b = (w.astype(jnp.bfloat16) for w in (w1_t, w2_t, w3_t))
    h1 = jnp.maximum(
        jnp.dot(xb, w1b, preferred_element_type=jnp.float32) + b1, 0.0
    ).astype(jnp.bfloat16)
    h2 = jnp.maximum(
        jnp.dot(h1, w2b, preferred_element_type=jnp.float32) + b2, 0.0
    ).astype(jnp.bfloat16)
    y_ref_bf16 = jnp.dot(h2, w3b, preferred_element_type=jnp.float32) + b3
    assert jnp.allclose(y, y_ref_bf16, atol=1e-2, rtol=1e-2)

    # Reference 2: full-f32 math (module semantics), loose tolerance for bf16 operands.
    h1f = jnp.maximum(x @ w1_t + b1, 0.0)
    h2f = jnp.maximum(h1f @ w2_t + b2, 0.0)
    y_ref_f32 = h2f @ w3_t + b3
    assert jnp.allclose(y, y_ref_f32, atol=5e-2, rtol=5e-2)

    print("KERNEL_OK")
</pallas_src>

<mosaic_0001>
module attributes {stable_mosaic.version = 11 : i64} {
  func.func @mlp_kernel(%arg0: i32, %arg1: memref<128x256xbf16, #tpu.memory_space<vmem>>, %arg2: memref<256x256xbf16, #tpu.memory_space<vmem>>, %arg3: memref<1x256xf32, #tpu.memory_space<vmem>>, %arg4: memref<256x256xbf16, #tpu.memory_space<vmem>>, %arg5: memref<1x256xf32, #tpu.memory_space<vmem>>, %arg6: memref<256x256xbf16, #tpu.memory_space<vmem>>, %arg7: memref<1x256xf32, #tpu.memory_space<vmem>>, %arg8: memref<128x256xf32, #tpu.memory_space<vmem>>) attributes {dimension_semantics = [#tpu.dimension_semantics<parallel>], iteration_bounds = array<i64: 1>, scalar_prefetch = 0 : i64, scratch_operands = 0 : i64, tpu.core_type = #tpu.core_type<tc>, window_params = [{transform_indices = @transform_0, window_bounds = array<i64: 128, 256>}, {pipeline_mode = #tpu.pipeline_mode<synchronous>, transform_indices = @transform_1, window_bounds = array<i64: 256, 256>}, {pipeline_mode = #tpu.pipeline_mode<synchronous>, transform_indices = @transform_2, window_bounds = array<i64: 1, 256>}, {pipeline_mode = #tpu.pipeline_mode<synchronous>, transform_indices = @transform_3, window_bounds = array<i64: 256, 256>}, {pipeline_mode = #tpu.pipeline_mode<synchronous>, transform_indices = @transform_4, window_bounds = array<i64: 1, 256>}, {pipeline_mode = #tpu.pipeline_mode<synchronous>, transform_indices = @transform_5, window_bounds = array<i64: 256, 256>}, {pipeline_mode = #tpu.pipeline_mode<synchronous>, transform_indices = @transform_6, window_bounds = array<i64: 1, 256>}, {transform_indices = @transform_7, window_bounds = array<i64: 128, 256>}]} {
    %c0 = arith.constant 0 : index
    %c0_0 = arith.constant 0 : index
    %0 = vector.load %arg1[%c0, %c0_0] : memref<128x256xbf16, #tpu.memory_space<vmem>>, vector<128x256xbf16>
    %c0_1 = arith.constant 0 : index
    %c0_2 = arith.constant 0 : index
    %1 = vector.load %arg2[%c0_1, %c0_2] : memref<256x256xbf16, #tpu.memory_space<vmem>>, vector<256x256xbf16>
    %cst = arith.constant dense<0.000000e+00> : vector<128x256xf32>
    %2 = tpu.matmul %0, %1, %cst {dimension_numbers = #tpu.dot_dimension_numbers<[1], [0], [0], [1], [0, 0, 1, 1], [], []>} : vector<128x256xbf16>, vector<256x256xbf16>, vector<128x256xf32> -> vector<128x256xf32>
    %c0_3 = arith.constant 0 : index
    %c0_4 = arith.constant 0 : index
    %3 = vector.load %arg3[%c0_3, %c0_4] : memref<1x256xf32, #tpu.memory_space<vmem>>, vector<1x256xf32>
    %4 = vector.broadcast %3 : vector<1x256xf32> to vector<128x256xf32>
    %5 = arith.addf %2, %4 : vector<128x256xf32>
    %cst_5 = arith.constant 0.000000e+00 : f32
    %6 = vector.broadcast %cst_5 : f32 to vector<128x256xf32>
    %7 = arith.maximumf %5, %6 : vector<128x256xf32>
    %8 = arith.truncf %7 : vector<128x256xf32> to vector<128x256xbf16>
    %c0_6 = arith.constant 0 : index
    %c0_7 = arith.constant 0 : index
    %9 = vector.load %arg4[%c0_6, %c0_7] : memref<256x256xbf16, #tpu.memory_space<vmem>>, vector<256x256xbf16>
    %cst_8 = arith.constant dense<0.000000e+00> : vector<128x256xf32>
    %10 = tpu.matmul %8, %9, %cst_8 {dimension_numbers = #tpu.dot_dimension_numbers<[1], [0], [0], [1], [0, 0, 1, 1], [], []>} : vector<128x256xbf16>, vector<256x256xbf16>, vector<128x256xf32> -> vector<128x256xf32>
    %c0_9 = arith.constant 0 : index
    %c0_10 = arith.constant 0 : index
    %11 = vector.load %arg5[%c0_9, %c0_10] : memref<1x256xf32, #tpu.memory_space<vmem>>, vector<1x256xf32>
    %12 = vector.broadcast %11 : vector<1x256xf32> to vector<128x256xf32>
    %13 = arith.addf %10, %12 : vector<128x256xf32>
    %cst_11 = arith.constant 0.000000e+00 : f32
    %14 = vector.broadcast %cst_11 : f32 to vector<128x256xf32>
    %15 = arith.maximumf %13, %14 : vector<128x256xf32>
    %16 = arith.truncf %15 : vector<128x256xf32> to vector<128x256xbf16>
    %c0_12 = arith.constant 0 : index
    %c0_13 = arith.constant 0 : index
    %17 = vector.load %arg6[%c0_12, %c0_13] : memref<256x256xbf16, #tpu.memory_space<vmem>>, vector<256x256xbf16>
    %cst_14 = arith.constant dense<0.000000e+00> : vector<128x256xf32>
    %18 = tpu.matmul %16, %17, %cst_14 {dimension_numbers = #tpu.dot_dimension_numbers<[1], [0], [0], [1], [0, 0, 1, 1], [], []>} : vector<128x256xbf16>, vector<256x256xbf16>, vector<128x256xf32> -> vector<128x256xf32>
    %c0_15 = arith.constant 0 : index
    %c0_16 = arith.constant 0 : index
    %19 = vector.load %arg7[%c0_15, %c0_16] : memref<1x256xf32, #tpu.memory_space<vmem>>, vector<1x256xf32>
    %20 = vector.broadcast %19 : vector<1x256xf32> to vector<128x256xf32>
    %21 = arith.addf %18, %20 : vector<128x256xf32>
    %c0_17 = arith.constant 0 : index
    %c0_18 = arith.constant 0 : index
    %22 = vector.load %arg8[%c0_17, %c0_18] : memref<128x256xf32, #tpu.memory_space<vmem>>, vector<128x256xf32>
    tpu.vector_store %arg8[%c0_17, %c0_18], %21 {strides = array<i32>} : memref<128x256xf32, #tpu.memory_space<vmem>>, vector<128x256xf32>,
    return
  }
  func.func @transform_0(%arg0: i32) -> (i32, i32) {
    %c0_i32 = arith.constant 0 : i32
    %c0_i32_0 = arith.constant 0 : i32
    return %arg0, %c0_i32 : i32, i32
  }
  func.func @transform_1(%arg0: i32) -> (i32, i32) {
    %c0_i32 = arith.constant 0 : i32
    %c0_i32_0 = arith.constant 0 : i32
    %c0_i32_1 = arith.constant 0 : i32
    return %c0_i32, %c0_i32_0 : i32, i32
  }
  func.func @transform_2(%arg0: i32) -> (i32, i32) {
    %c0_i32 = arith.constant 0 : i32
    %c0_i32_0 = arith.constant 0 : i32
    %c0_i32_1 = arith.constant 0 : i32
    return %c0_i32, %c0_i32_0 : i32, i32
  }
  func.func @transform_3(%arg0: i32) -> (i32, i32) {
    %c0_i32 = arith.constant 0 : i32
    %c0_i32_0 = arith.constant 0 : i32
    %c0_i32_1 = arith.constant 0 : i32
    return %c0_i32, %c0_i32_0 : i32, i32
  }
  func.func @transform_4(%arg0: i32) -> (i32, i32) {
    %c0_i32 = arith.constant 0 : i32
    %c0_i32_0 = arith.constant 0 : i32
    %c0_i32_1 = arith.constant 0 : i32
    return %c0_i32, %c0_i32_0 : i32, i32
  }
  func.func @transform_5(%arg0: i32) -> (i32, i32) {
    %c0_i32 = arith.constant 0 : i32
    %c0_i32_0 = arith.constant 0 : i32
    %c0_i32_1 = arith.constant 0 : i32
    return %c0_i32, %c0_i32_0 : i32, i32
  }
  func.func @transform_6(%arg0: i32) -> (i32, i32) {
    %c0_i32 = arith.constant 0 : i32
    %c0_i32_0 = arith.constant 0 : i32
    %c0_i32_1 = arith.constant 0 : i32
    return %c0_i32, %c0_i32_0 : i32, i32
  }
  func.func @transform_7(%arg0: i32) -> (i32, i32) {
    %c0_i32 = arith.constant 0 : i32
    %c0_i32_0 = arith.constant 0 : i32
    return %arg0, %c0_i32 : i32, i32
  }
}

module attributes {stable_mosaic.version = 11 : i64} {
  func.func @mlp_kernel(%arg0: i32, %arg1: memref<128x256xbf16, #tpu.memory_space<vmem>>, %arg2: memref<256x256xbf16, #tpu.memory_space<vmem>>, %arg3: memref<1x256xf32, #tpu.memory_space<vmem>>, %arg4: memref<256x256xbf16, #tpu.memory_space<vmem>>, %arg5: memref<1x256xf32, #tpu.memory_space<vmem>>, %arg6: memref<256x256xbf16, #tpu.memory_space<vmem>>, %arg7: memref<1x256xf32, #tpu.memory_space<vmem>>, %arg8: memref<128x256xf32, #tpu.memory_space<vmem>>) attributes {dimension_semantics = [#tpu.dimension_semantics<parallel>], iteration_bounds = array<i64: 1>, scalar_prefetch = 0 : i64, scratch_operands = 0 : i64, tpu.core_type = #tpu.core_type<tc>, window_params = [{transform_indices = @transform_0, window_bounds = array<i64: 128, 256>}, {pipeline_mode = #tpu.pipeline_mode<synchronous>, transform_indices = @transform_1, window_bounds = array<i64: 256, 256>}, {pipeline_mode = #tpu.pipeline_mode<synchronous>, transform_indices = @transform_2, window_bounds = array<i64: 1, 256>}, {pipeline_mode = #tpu.pipeline_mode<synchronous>, transform_indices = @transform_3, window_bounds = array<i64: 256, 256>}, {pipeline_mode = #tpu.pipeline_mode<synchronous>, transform_indices = @transform_4, window_bounds = array<i64: 1, 256>}, {pipeline_mode = #tpu.pipeline_mode<synchronous>, transform_indices = @transform_5, window_bounds = array<i64: 256, 256>}, {pipeline_mode = #tpu.pipeline_mode<synchronous>, transform_indices = @transform_6, window_bounds = array<i64: 1, 256>}, {transform_indices = @transform_7, window_bounds = array<i64: 128, 256>}]} {
    %c0 = arith.constant 0 : index
    %c0_0 = arith.constant 0 : index
    %0 = vector.load %arg1[%c0, %c0_0] : memref<128x256xbf16, #tpu.memory_space<vmem>>, vector<128x256xbf16>
    %c0_1 = arith.constant 0 : index
    %c0_2 = arith.constant 0 : index
    %1 = vector.load %arg2[%c0_1, %c0_2] : memref<256x256xbf16, #tpu.memory_space<vmem>>, vector<256x256xbf16>
    %cst = arith.constant dense<0.000000e+00> : vector<128x256xf32>
    %2 = tpu.matmul %0, %1, %cst {dimension_numbers = #tpu.dot_dimension_numbers<[1], [0], [0], [1], [0, 0, 1, 1], [], []>} : vector<128x256xbf16>, vector<256x256xbf16>, vector<128x256xf32> -> vector<128x256xf32>
    %c0_3 = arith.constant 0 : index
    %c0_4 = arith.constant 0 : index
    %3 = vector.load %arg3[%c0_3, %c0_4] : memref<1x256xf32, #tpu.memory_space<vmem>>, vector<1x256xf32>
    %4 = vector.broadcast %3 : vector<1x256xf32> to vector<128x256xf32>
    %5 = arith.addf %2, %4 : vector<128x256xf32>
    %cst_5 = arith.constant 0.000000e+00 : f32
    %6 = vector.broadcast %cst_5 : f32 to vector<128x256xf32>
    %7 = arith.maximumf %5, %6 : vector<128x256xf32>
    %8 = arith.truncf %7 : vector<128x256xf32> to vector<128x256xbf16>
    %c0_6 = arith.constant 0 : index
    %c0_7 = arith.constant 0 : index
    %9 = vector.load %arg4[%c0_6, %c0_7] : memref<256x256xbf16, #tpu.memory_space<vmem>>, vector<256x256xbf16>
    %cst_8 = arith.constant dense<0.000000e+00> : vector<128x256xf32>
    %10 = tpu.matmul %8, %9, %cst_8 {dimension_numbers = #tpu.dot_dimension_numbers<[1], [0], [0], [1], [0, 0, 1, 1], [], []>} : vector<128x256xbf16>, vector<256x256xbf16>, vector<128x256xf32> -> vector<128x256xf32>
    %c0_9 = arith.constant 0 : index
    %c0_10 = arith.constant 0 : index
    %11 = vector.load %arg5[%c0_9, %c0_10] : memref<1x256xf32, #tpu.memory_space<vmem>>, vector<1x256xf32>
    %12 = vector.broadcast %11 : vector<1x256xf32> to vector<128x256xf32>
    %13 = arith.addf %10, %12 : vector<128x256xf32>
    %cst_11 = arith.constant 0.000000e+00 : f32
    %14 = vector.broadcast %cst_11 : f32 to vector<128x256xf32>
    %15 = arith.maximumf %13, %14 : vector<128x256xf32>
    %16 = arith.truncf %15 : vector<128x256xf32> to vector<128x256xbf16>
    %c0_12 = arith.constant 0 : index
    %c0_13 = arith.constant 0 : index
    %17 = vector.load %arg6[%c0_12, %c0_13] : memref<256x256xbf16, #tpu.memory_space<vmem>>, vector<256x256xbf16>
    %cst_14 = arith.constant dense<0.000000e+00> : vector<128x256xf32>
    %18 = tpu.matmul %16, %17, %cst_14 {dimension_numbers = #tpu.dot_dimension_numbers<[1], [0], [0], [1], [0, 0, 1, 1], [], []>} : vector<128x256xbf16>, vector<256x256xbf16>, vector<128x256xf32> -> vector<128x256xf32>
    %c0_15 = arith.constant 0 : index
    %c0_16 = arith.constant 0 : index
    %19 = vector.load %arg7[%c0_15, %c0_16] : memref<1x256xf32, #tpu.memory_space<vmem>>, vector<1x256xf32>
    %20 = vector.broadcast %19 : vector<1x256xf32> to vector<128x256xf32>
    %21 = arith.addf %18, %20 : vector<128x256xf32>
    %c0_17 = arith.constant 0 : index
    %c0_18 = arith.constant 0 : index
    %22 = vector.load %arg8[%c0_17, %c0_18] : memref<128x256xf32, #tpu.memory_space<vmem>>, vector<128x256xf32>
    tpu.vector_store %arg8[%c0_17, %c0_18], %21 {strides = array<i32>} : memref<128x256xf32, #tpu.memory_space<vmem>>, vector<128x256xf32>,
    return
  }
  func.func @transform_0(%arg0: i32) -> (i32, i32) {
    %c0_i32 = arith.constant 0 : i32
    %c0_i32_0 = arith.constant 0 : i32
    return %arg0, %c0_i32 : i32, i32
  }
  func.func @transform_1(%arg0: i32) -> (i32, i32) {
    %c0_i32 = arith.constant 0 : i32
    %c0_i32_0 = arith.constant 0 : i32
    %c0_i32_1 = arith.constant 0 : i32
    return %c0_i32, %c0_i32_0 : i32, i32
  }
  func.func @transform_2(%arg0: i32) -> (i32, i32) {
    %c0_i32 = arith.constant 0 : i32
    %c0_i32_0 = arith.constant 0 : i32
    %c0_i32_1 = arith.constant 0 : i32
    return %c0_i32, %c0_i32_0 : i32, i32
  }
  func.func @transform_3(%arg0: i32) -> (i32, i32) {
    %c0_i32 = arith.constant 0 : i32
    %c0_i32_0 = arith.constant 0 : i32
    %c0_i32_1 = arith.constant 0 : i32
    return %c0_i32, %c0_i32_0 : i32, i32
  }
  func.func @transform_4(%arg0: i32) -> (i32, i32) {
    %c0_i32 = arith.constant 0 : i32
    %c0_i32_0 = arith.constant 0 : i32
    %c0_i32_1 = arith.constant 0 : i32
    return %c0_i32, %c0_i32_0 : i32, i32
  }
  func.func @transform_5(%arg0: i32) -> (i32, i32) {
    %c0_i32 = arith.constant 0 : i32
    %c0_i32_0 = arith.constant 0 : i32
    %c0_i32_1 = arith.constant 0 : i32
    return %c0_i32, %c0_i32_0 : i32, i32
  }
  func.func @transform_6(%arg0: i32) -> (i32, i32) {
    %c0_i32 = arith.constant 0 : i32
    %c0_i32_0 = arith.constant 0 : i32
    %c0_i32_1 = arith.constant 0 : i32
    return %c0_i32, %c0_i32_0 : i32, i32
  }
  func.func @transform_7(%arg0: i32) -> (i32, i32) {
    %c0_i32 = arith.constant 0 : i32
    %c0_i32_0 = arith.constant 0 : i32
    return %arg0, %c0_i32 : i32, i32
  }
}

</mosaic_0001>

<bundles_post_ra>
// kernel: tpu_custom_call.1
= control target key start
LH: loop header
LB: loop body
LE: loop exit
PB: predicated region body
PF: predicated region fallthrough
CT: control target
= control target key end

     0   :  { %12 = vsyncpa [#allocation3], 0  ;;  %s2085_s0 = inlined_call_operand.hbm [shape: bf16[128,256], index: 0, kind: input, shape index: {}]   ;;  %s2086_s1 = inlined_call_operand.hbm [shape: bf16[256,256], index: 1, kind: input, shape index: {}]   ;;  %s2087_s2 = inlined_call_operand.vmem [shape: f32[1,256], index: 2, kind: input, shape index: {}]   ;;  %s2088_s3 = inlined_call_operand.hbm [shape: bf16[256,256], index: 3, kind: input, shape index: {}]   ;;  %s2089_s4 = inlined_call_operand.vmem [shape: f32[1,256], index: 4, kind: input, shape index: {}]   ;;  %s2090_s5 = inlined_call_operand.hbm [shape: bf16[256,256], index: 5, kind: input, shape index: {}]   ;;  %s2091_s6 = inlined_call_operand.vmem [shape: f32[1,256], index: 6, kind: input, shape index: {}]   ;;  %s2092_s7 = inlined_call_operand.hbm [shape: f32[128,256], index: 7, kind: output, shape index: {}]  }
   0x1   :  { %13 = vsyncpa [#allocation6], 0 }
   0x2   :  { %14 = vsyncpa [#allocation9], 0 }
   0x3   :  { %15 = vsyncpa [#allocation4], 0  ;;  %s1715_s24 = smov [#allocation5]   ;;  %s1716_s26 = smov [#allocation2]  }
   0x4   :  { %s33_s25 = sshll.u32 %s1715_s24, 4  ;;  %s21_s27 = sshll.u32 %s1716_s26, 4  ;;  %s34_s25 = int_to_ptr.vmem [resolvable:$true] %s33_s25  ;;  %s1764_s27 = int_to_ptr.vmem [resolvable:$true] %s21_s27 }
   0x5   :  { %s1597_s30 = scalar_lea.hbm %s2086_s1, 4096 }
   0x6   :  { %p1598_p0 = scmp.ne.s32.totalorder %s2086_s1, %s1597_s30  ;;  %p1601_p1 = scmp.lt.u32.totalorder %s1597_s30, %s2086_s1 }
   0x8   :  { %p1603_p2 = pnand %p1601_p1, %p1598_p0 }
   0xa   :  { %1606 = shalt.err (!%p1603_p2)
}
   0xb   :  { %s1607_s12 = scalar_lea.vmem %s34_s25, 4096  ;;  %p1612_p4 = scmp.lt.s32.totalorder %s34_s25, %s34_s25 }
   0xc   :  { %p1608_p3 = scmp.ne.s32.totalorder %s34_s25, %s1607_s12  ;;  %p1613_p5 = scmp.lt.s32.totalorder %s1607_s12, %s1607_s12 }
   0xe   :  { %p1614_p6 = por %p1613_p5, %p1612_p4 }
  0x10   :  { %p1615_p7 = pnand %p1614_p6, %p1608_p3 }
  0x12   :  { %1618 = shalt.err (!%p1615_p7)
}
  0x13   :  { %s1717_s13 = smov 128   ;;  %s1718_s14 = smov 8  }
  0x14   :  { %39 = dma.hbm_to_vmem [thread:$0]  %s2086_s1, 4096, %s34_s25, [#allocation6], %s1717_s13, %s1717_s13, %s1718_s14  }
  0x15   :  { %s1619_s19 = scalar_lea.hbm %s2085_s0, 2048 }
  0x16   :  { %p1620_p8 = scmp.ne.s32.totalorder %s2085_s0, %s1619_s19  ;;  %p1623_p9 = scmp.lt.u32.totalorder %s1619_s19, %s2085_s0 }
  0x18   :  { %p1625_p10 = pnand %p1623_p9, %p1620_p8 }
  0x1a   :  { %1628 = shalt.err (!%p1625_p10)
}
  0x1b   :  { %s1629_s24 = scalar_lea.vmem %s1764_s27, 2048  ;;  %p1634_p12 = scmp.lt.s32.totalorder %s1764_s27, %s1764_s27 }
  0x1c   :  { %p1630_p11 = scmp.ne.s32.totalorder %s1764_s27, %s1629_s24  ;;  %p1635_p13 = scmp.lt.s32.totalorder %s1629_s24, %s1629_s24 }
  0x1e   :  { %p1636_p0 = por %p1635_p13, %p1634_p12 }
  0x20   :  { %p1637_p1 = pnand %p1636_p0, %p1630_p11 }
  0x22   :  { %1640 = shalt.err (!%p1637_p1)
}
  0x23   :  { %27 = dma.hbm_to_vmem [thread:$0]  %s2085_s0, 2048, %s1764_s27, [#allocation3], %s1717_s13, %s1717_s13, %s1718_s14  }
  0x24   :  { %s1719_s26 = smov [#allocation7]   ;;  %s1720_s29 = smov [#allocation8]  }
  0x25   :  { %s47_s28 = sshll.u32 %s1719_s26, 4  ;;  %s61_s30 = sshll.u32 %s1720_s29, 4  ;;  %s48_s28 = int_to_ptr.vmem [resolvable:$true] %s47_s28  ;;  %s1801_s30 = int_to_ptr.vmem [resolvable:$true] %s61_s30 }
  0x26   :  { %s1641_s10 = scalar_lea.hbm %s2088_s3, 4096 }
  0x27   :  { %p1642_p2 = scmp.ne.s32.totalorder %s2088_s3, %s1641_s10  ;;  %p1645_p3 = scmp.lt.u32.totalorder %s1641_s10, %s2088_s3 }
  0x29   :  { %p1647_p4 = pnand %p1645_p3, %p1642_p2 }
  0x2b   :  { %1650 = shalt.err (!%p1647_p4)
}
  0x2c   :  { %s1651_s0 = scalar_lea.vmem %s48_s28, 4096  ;;  %p1656_p6 = scmp.lt.s32.totalorder %s48_s28, %s48_s28 }
  0x2d   :  { %p1652_p5 = scmp.ne.s32.totalorder %s48_s28, %s1651_s0  ;;  %p1657_p7 = scmp.lt.s32.totalorder %s1651_s0, %s1651_s0 }
  0x2f   :  { %p1658_p8 = por %p1657_p7, %p1656_p6 }
  0x31   :  { %p1659_p9 = pnand %p1658_p8, %p1652_p5 }
  0x33   :  { %1662 = shalt.err (!%p1659_p9)
}
  0x34   :  { %53 = dma.hbm_to_vmem [thread:$0]  %s2088_s3, 4096, %s48_s28, [#allocation6], %s1717_s13, %s1717_s13, %s1718_s14  }
  0x35   :  { %s1663_s20 = scalar_lea.hbm %s2090_s5, 4096 }
  0x36   :  { %p1664_p10 = scmp.ne.s32.totalorder %s2090_s5, %s1663_s20  ;;  %p1667_p11 = scmp.lt.u32.totalorder %s1663_s20, %s2090_s5 }
  0x38   :  { %p1669_p12 = pnand %p1667_p11, %p1664_p10 }
  0x3a   :  { %1672 = shalt.err (!%p1669_p12)
}
  0x3b   :  { %s1673_s1 = scalar_lea.vmem %s1801_s30, 4096  ;;  %p1678_p0 = scmp.lt.s32.totalorder %s1801_s30, %s1801_s30 }
  0x3c   :  { %p1674_p13 = scmp.ne.s32.totalorder %s1801_s30, %s1673_s1  ;;  %p1679_p1 = scmp.lt.s32.totalorder %s1673_s1, %s1673_s1 }
  0x3e   :  { %p1680_p2 = por %p1679_p1, %p1678_p0 }
  0x40   :  { %p1681_p3 = pnand %p1680_p2, %p1674_p13 }
  0x42   :  { %1684 = shalt.err (!%p1681_p3)
}
  0x43   :  { %67 = dma.hbm_to_vmem [thread:$0]  %s2090_s5, 4096, %s1801_s30, [#allocation9], %s1717_s13, %s1717_s13, %s1718_s14  }
  0x44   :  { %1707 = dma.done.wait [#allocation3], 2048  }
  0x45   :  { %1708 = vsyncadd [#allocation3], 4294965248 }
  0x46   :  { %1709 = dma.done.wait [#allocation6], 8192  }
  0x47   :  { %1710 = vsyncadd [#allocation6], 4294959104 }
  0x48   :  { %1711 = dma.done.wait [#allocation9], 4096  }
  0x49   :  { %1712 = vsyncadd [#allocation9], 4294963200  ;;  %v1429_v0 = vld [vmem:[#allocation5 + $0x4] ss:$8 sps:$4 sm:$0xff]   ;;  %v1431_v1 = vld [vmem:[#allocation5] ss:$8 sps:$4 sm:$0xff]  }
  0x4a   :  { %382 = vmatprep.subr.bf16.mxu0 %v1429_v0  ;;  %v1432_v2 = vld [vmem:[#allocation5 + $0x14] ss:$8 sps:$4 sm:$0xff]   ;;  %v1434_v3 = vld [vmem:[#allocation5 + $0x10] ss:$8 sps:$4 sm:$0xff]   ;;  %v1435_v4 = vld [vmem:[#allocation5 + $0x24] ss:$8 sps:$4 sm:$0xff]  }
  0x4b   :  { %383 = vmatpush1.bf16.msra.mxu0 %v1431_v1  ;;  %v1437_v5 = vld [vmem:[#allocation5 + $0x20] ss:$8 sps:$4 sm:$0xff]   ;;  %v1438_v6 = vld [vmem:[#allocation5 + $0x34] ss:$8 sps:$4 sm:$0xff]   ;;  %v1440_v7 = vld [vmem:[#allocation5 + $0x30] ss:$8 sps:$4 sm:$0xff]  }
  0x4c   :  { %384 = vmatprep.subr.bf16.mxu0 %v1432_v2  ;;  %v1441_v8 = vld [vmem:[#allocation5 + $0x44] ss:$8 sps:$4 sm:$0xff]   ;;  %v1443_v9 = vld [vmem:[#allocation5 + $0x40] ss:$8 sps:$4 sm:$0xff]   ;;  %v1444_v10 = vld [vmem:[#allocation5 + $0x54] ss:$8 sps:$4 sm:$0xff]  }
  0x4d   :  { %v1446_v11 = vld [vmem:[#allocation5 + $0x50] ss:$8 sps:$4 sm:$0xff]   ;;  %v1447_v12 = vld [vmem:[#allocation5 + $0x64] ss:$8 sps:$4 sm:$0xff]   ;;  %v1449_v14 = vld [vmem:[#allocation5 + $0x60] ss:$8 sps:$4 sm:$0xff]  }
  0x4e   :  { %v1479_v13 = vld [vmem:[#allocation2 + $0x4] ss:$8 sps:$4 sm:$0xff]   ;;  %v1450_v15 = vld [vmem:[#allocation5 + $0x74] ss:$8 sps:$4 sm:$0xff]   ;;  %v1452_v16 = vld [vmem:[#allocation5 + $0x70] ss:$8 sps:$4 sm:$0xff]  }
  0x4f   :  { %385 = vmatpush1.bf16.msra.mxu0 %v1434_v3  ;;  %414 = vmatprep.mubr.bf16.mxu0 %v1479_v13  ;;  %v1453_v17 = vld [vmem:[#allocation5 + $0x84] ss:$8 sps:$4 sm:$0xff]   ;;  %v1455_v18 = vld [vmem:[#allocation5 + $0x80] ss:$8 sps:$4 sm:$0xff]   ;;  %v1456_v19 = vld [vmem:[#allocation5 + $0x94] ss:$8 sps:$4 sm:$0xff]  }
  0x50   :  { %386 = vmatprep.subr.bf16.mxu0 %v1435_v4  ;;  %v1501_v20 = vld [vmem:[#allocation7 + $0x4] ss:$8 sps:$4 sm:$0xff]   ;;  %v1503_v21 = vld [vmem:[#allocation7] ss:$8 sps:$4 sm:$0xff]   ;;  %v1458_v22 = vld [vmem:[#allocation5 + $0x90] ss:$8 sps:$4 sm:$0xff]  }
  0x51   :  { %747 = vmatprep.subr.bf16.mxu1 %v1501_v20  ;;  %v1504_v23 = vld [vmem:[#allocation7 + $0x14] ss:$8 sps:$4 sm:$0xff]   ;;  %v1459_v24 = vld [vmem:[#allocation5 + $0xa4] ss:$8 sps:$4 sm:$0xff]   ;;  %v1506_v25 = vld [vmem:[#allocation7 + $0x10] ss:$8 sps:$4 sm:$0xff]  }
  0x52   :  { %748 = vmatpush1.bf16.msra.mxu1 %v1503_v21  ;;  %v1507_v26 = vld [vmem:[#allocation7 + $0x24] ss:$8 sps:$4 sm:$0xff]   ;;  %v1461_v27 = vld [vmem:[#allocation5 + $0xa0] ss:$8 sps:$4 sm:$0xff]   ;;  %v1462_v28 = vld [vmem:[#allocation5 + $0xb4] ss:$8 sps:$4 sm:$0xff]  }
  0x53   :  { %387 = vmatpush1.bf16.msra.mxu0 %v1437_v5  ;;  %749 = vmatprep.subr.bf16.mxu1 %v1504_v23  ;;  %v1509_v29 = vld [vmem:[#allocation7 + $0x20] ss:$8 sps:$4 sm:$0xff]   ;;  %v1510_v30 = vld [vmem:[#allocation7 + $0x34] ss:$8 sps:$4 sm:$0xff]   ;;  %v1464_v31 = vld [vmem:[#allocation5 + $0xb0] ss:$8 sps:$4 sm:$0xff]  }
  0x54   :  { %388 = vmatprep.subr.bf16.mxu0 %v1438_v6  ;;  %v1465_v32 = vld [vmem:[#allocation5 + $0xc4] ss:$8 sps:$4 sm:$0xff]   ;;  %v1512_v33 = vld [vmem:[#allocation7 + $0x30] ss:$8 sps:$4 sm:$0xff]   ;;  %v1467_v35 = vld [vmem:[#allocation5 + $0xc0] ss:$8 sps:$4 sm:$0xff]  }
  0x55   :  { %v1513_v34 = vld [vmem:[#allocation7 + $0x44] ss:$8 sps:$4 sm:$0xff]   ;;  %v1468_v36 = vld [vmem:[#allocation5 + $0xd4] ss:$8 sps:$4 sm:$0xff]   ;;  %v1515_v37 = vld [vmem:[#allocation7 + $0x40] ss:$8 sps:$4 sm:$0xff]  }
  0x56   :  { %750 = vmatpush1.bf16.msra.mxu1 %v1506_v25  ;;  %v1516_v38 = vld [vmem:[#allocation7 + $0x54] ss:$8 sps:$4 sm:$0xff]   ;;  %v1470_v39 = vld [vmem:[#allocation5 + $0xd0] ss:$8 sps:$4 sm:$0xff]   ;;  %v1471_v40 = vld [vmem:[#allocation5 + $0xe4] ss:$8 sps:$4 sm:$0xff]  }
  0x57   :  { %389 = vmatpush1.bf16.msra.mxu0 %v1440_v7  ;;  %751 = vmatprep.subr.bf16.mxu1 %v1507_v26  ;;  %v1518_v41 = vld [vmem:[#allocation7 + $0x50] ss:$8 sps:$4 sm:$0xff]   ;;  %v1519_v42 = vld [vmem:[#allocation7 + $0x64] ss:$8 sps:$4 sm:$0xff]   ;;  %v1473_v43 = vld [vmem:[#allocation5 + $0xe0] ss:$8 sps:$4 sm:$0xff]  }
  0x58   :  { %390 = vmatprep.subr.bf16.mxu0 %v1441_v8  ;;  %v1521_v44 = vld [vmem:[#allocation7 + $0x60] ss:$8 sps:$4 sm:$0xff]   ;;  %v1474_v45 = vld [vmem:[#allocation5 + $0xf4] ss:$8 sps:$4 sm:$0xff]   ;;  %v1476_v47 = vld [vmem:[#allocation5 + $0xf0] ss:$8 sps:$4 sm:$0xff]  }
  0x59   :  { %v1522_v46 = vld [vmem:[#allocation7 + $0x74] ss:$8 sps:$4 sm:$0xff]   ;;  %v1524_v48 = vld [vmem:[#allocation7 + $0x70] ss:$8 sps:$4 sm:$0xff]   ;;  %v1525_v49 = vld [vmem:[#allocation7 + $0x84] ss:$8 sps:$4 sm:$0xff]  }
  0x5a   :  { %752 = vmatpush1.bf16.msra.mxu1 %v1509_v29  ;;  %v1477_v50 = vld [vmem:[#allocation2] ss:$8 sps:$4 sm:$0xff]   ;;  %v1480_v51 = vld [vmem:[#allocation2 + $0x14] ss:$8 sps:$4 sm:$0xff]   ;;  %v1530_v54 = vld [vmem:[#allocation7 + $0x90] ss:$8 sps:$4 sm:$0xff]  }
  0x5b   :  { %391 = vmatpush1.bf16.msra.mxu0 %v1443_v9  ;;  %753 = vmatprep.subr.bf16.mxu1 %v1510_v30  ;;  %v1527_v52 = vld [vmem:[#allocation7 + $0x80] ss:$8 sps:$4 sm:$0xff]   ;;  %v1528_v53 = vld [vmem:[#allocation7 + $0x94] ss:$8 sps:$4 sm:$0xff]   ;;  %v1531_v55 = vld [vmem:[#allocation7 + $0xa4] ss:$8 sps:$4 sm:$0xff]  }
  0x5c   :  { %392 = vmatprep.subr.bf16.mxu0 %v1444_v10  ;;  %v1482_v56 = vld [vmem:[#allocation2 + $0x10] ss:$8 sps:$4 sm:$0xff]   ;;  %v1483_v57 = vld [vmem:[#allocation2 + $0x24] ss:$8 sps:$4 sm:$0xff]   ;;  %v1533_v58 = vld [vmem:[#allocation7 + $0xa0] ss:$8 sps:$4 sm:$0xff]  }
  0x5d   :  { %v1534_v59 = vld [vmem:[#allocation7 + $0xb4] ss:$8 sps:$4 sm:$0xff]   ;;  %v1536_v60 = vld [vmem:[#allocation7 + $0xb0] ss:$8 sps:$4 sm:$0xff]   ;;  %v1537_v61 = vld [vmem:[#allocation7 + $0xc4] ss:$8 sps:$4 sm:$0xff]  }
  0x5e   :  { %754 = vmatpush1.bf16.msra.mxu1 %v1512_v33  ;;  %v1485_v62 = vld [vmem:[#allocation2 + $0x20] ss:$8 sps:$4 sm:$0xff]   ;;  %v1486_v63 = vld [vmem:[#allocation2 + $0x34] ss:$8 sps:$4 sm:$0xff]   ;;  %v1488_v2 = vld [vmem:[#allocation2 + $0x30] ss:$8 sps:$4 sm:$0xff]  }
  0x5f   :  { %393 = vmatpush1.bf16.msra.mxu0 %v1446_v11  ;;  %755 = vmatprep.subr.bf16.mxu1 %v1513_v34  ;;  %v1539_v0 = vld [vmem:[#allocation7 + $0xc0] ss:$8 sps:$4 sm:$0xff]   ;;  %v1540_v1 = vld [vmem:[#allocation7 + $0xd4] ss:$8 sps:$4 sm:$0xff]   ;;  %v1489_v3 = vld [vmem:[#allocation2 + $0x44] ss:$8 sps:$4 sm:$0xff]  }
  0x60   :  { %394 = vmatprep.subr.bf16.mxu0 %v1447_v12  ;;  %v1491_v4 = vld [vmem:[#allocation2 + $0x40] ss:$8 sps:$4 sm:$0xff]   ;;  %v1492_v5 = vld [vmem:[#allocation2 + $0x54] ss:$8 sps:$4 sm:$0xff]   ;;  %v1494_v6 = vld [vmem:[#allocation2 + $0x50] ss:$8 sps:$4 sm:$0xff]  }
  0x61   :  { %v1495_v7 = vld [vmem:[#allocation2 + $0x64] ss:$8 sps:$4 sm:$0xff]   ;;  %v1497_v8 = vld [vmem:[#allocation2 + $0x60] ss:$8 sps:$4 sm:$0xff]   ;;  %v1498_v9 = vld [vmem:[#allocation2 + $0x74] ss:$8 sps:$4 sm:$0xff]  }
  0x62   :  { %756 = vmatpush1.bf16.msra.mxu1 %v1515_v37  ;;  %v1500_v10 = vld [vmem:[#allocation2 + $0x70] ss:$8 sps:$4 sm:$0xff]   ;;  %v1543_v12 = vld [vmem:[#allocation7 + $0xe4] ss:$8 sps:$4 sm:$0xff]   ;;  %v1545_v13 = vld [vmem:[#allocation7 + $0xe0] ss:$8 sps:$4 sm:$0xff]  }
  0x63   :  { %395 = vmatpush1.bf16.msra.mxu0 %v1449_v14  ;;  %757 = vmatprep.subr.bf16.mxu1 %v1516_v38  ;;  %v1542_v11 = vld [vmem:[#allocation7 + $0xd0] ss:$8 sps:$4 sm:$0xff]   ;;  %v1546_v14 = vld [vmem:[#allocation7 + $0xf4] ss:$8 sps:$4 sm:$0xff]   ;;  %v1846_v20 = vld [vmem:[#allocation8 + $0x24] ss:$8 sps:$4 sm:$0xff]  }
  0x64   :  { %396 = vmatprep.subr.bf16.mxu0 %v1450_v15  ;;  %v1548_v15 = vld [vmem:[#allocation7 + $0xf0] ss:$8 sps:$4 sm:$0xff]   ;;  %v1849_v21 = vld [vmem:[#allocation8 + $0x20] ss:$8 sps:$4 sm:$0xff]   ;;  %v1864_v26 = vld [vmem:[#allocation8 + $0x54] ss:$8 sps:$4 sm:$0xff]  }
  0x65   :  { %v1855_v23 = vld [vmem:[#allocation8 + $0x30] ss:$8 sps:$4 sm:$0xff]   ;;  %v1861_v25 = vld [vmem:[#allocation8 + $0x40] ss:$8 sps:$4 sm:$0xff]   ;;  %v1876_v30 = vld [vmem:[#allocation8 + $0x74] ss:$8 sps:$4 sm:$0xff]  }
  0x66   :  { %758 = vmatpush1.bf16.msra.mxu1 %v1518_v41  ;;  %v1873_v29 = vld [vmem:[#allocation8 + $0x60] ss:$8 sps:$4 sm:$0xff]   ;;  %v1888_v34 = vld [vmem:[#allocation8 + $0x94] ss:$8 sps:$4 sm:$0xff]   ;;  %v132_v41 = vlaneseq }
  0x67   :  { %397 = vmatpush1.bf16.msra.mxu0 %v1452_v16  ;;  %759 = vmatprep.subr.bf16.mxu1 %v1519_v42  ;;  %v1838_v16 = vld [vmem:[#allocation8] ss:$8 sps:$4 sm:$0xff]   ;;  %v1900_v38 = vld [vmem:[#allocation8 + $0xb4] ss:$8 sps:$4 sm:$0xff]  }
  0x68   :  { %398 = vmatprep.subr.bf16.mxu0 %v1453_v17  ;;  %v1551_v17 = vld [vmem:[#allocation8 + $0x4] ss:$8 sps:$4 sm:$0xff]   ;;  %v1885_v33 = vld [vmem:[#allocation8 + $0x80] ss:$8 sps:$4 sm:$0xff]  }
  0x69   :  { %v1897_v37 = vld [vmem:[#allocation8 + $0xa0] ss:$8 sps:$4 sm:$0xff]  }
  0x6a   :  { %760 = vmatpush1.bf16.msra.mxu1 %v1521_v44  ;;  %v1909_v42 = vld [vmem:[#allocation8 + $0xc0] ss:$8 sps:$4 sm:$0xff]   ;;  %v133_v44 = vshrl.u32 %v132_v41, 7 }
  0x6b   :  { %399 = vmatpush1.bf16.msra.mxu0 %v1455_v18  ;;  %761 = vmatprep.subr.bf16.mxu1 %v1522_v46  ;;  %v1840_v18 = vld [vmem:[#allocation8 + $0x14] ss:$8 sps:$4 sm:$0xff]  }
  0x6c   :  { %400 = vmatprep.subr.bf16.mxu0 %v1456_v19  ;;  %v1843_v19 = vld [vmem:[#allocation8 + $0x10] ss:$8 sps:$4 sm:$0xff]   ;;  %v1918_v46 = vsub.s32 0, %v133_v44 }
  0x6e   :  { %762 = vmatpush1.bf16.msra.mxu1 %v1524_v48  ;;  %v1923_v48 = vsub.s32 1, %v133_v44 }
  0x6f   :  { %401 = vmatpush1.bf16.msra.mxu0 %v1458_v22  ;;  %763 = vmatprep.subr.bf16.mxu1 %v1525_v49  ;;  %v1852_v22 = vld [vmem:[#allocation8 + $0x34] ss:$8 sps:$4 sm:$0xff]  }
  0x70   :  { %402 = vmatprep.subr.bf16.mxu0 %v1459_v24  ;;  %v1858_v24 = vld [vmem:[#allocation8 + $0x44] ss:$8 sps:$4 sm:$0xff]  }
  0x72   :  { %764 = vmatpush1.bf16.msra.mxu1 %v1527_v52 }
  0x73   :  { %403 = vmatpush1.bf16.msra.mxu0 %v1461_v27  ;;  %765 = vmatprep.subr.bf16.mxu1 %v1528_v53  ;;  %v1867_v27 = vld [vmem:[#allocation8 + $0x50] ss:$8 sps:$4 sm:$0xff]  }
  0x74   :  { %404 = vmatprep.subr.bf16.mxu0 %v1462_v28  ;;  %v1870_v28 = vld [vmem:[#allocation8 + $0x64] ss:$8 sps:$4 sm:$0xff]  }
  0x76   :  { %766 = vmatpush1.bf16.msra.mxu1 %v1530_v54 }
  0x77   :  { %405 = vmatpush1.bf16.msra.mxu0 %v1464_v31  ;;  %767 = vmatprep.subr.bf16.mxu1 %v1531_v55  ;;  %v1879_v31 = vld [vmem:[#allocation8 + $0x70] ss:$8 sps:$4 sm:$0xff]  }
  0x78   :  { %406 = vmatprep.subr.bf16.mxu0 %v1465_v32  ;;  %v1882_v32 = vld [vmem:[#allocation8 + $0x84] ss:$8 sps:$4 sm:$0xff]  }
  0x7a   :  { %768 = vmatpush1.bf16.msra.mxu1 %v1533_v58 }
  0x7b   :  { %407 = vmatpush1.bf16.msra.mxu0 %v1467_v35  ;;  %769 = vmatprep.subr.bf16.mxu1 %v1534_v59  ;;  %v1891_v35 = vld [vmem:[#allocation8 + $0x90] ss:$8 sps:$4 sm:$0xff]  }
  0x7c   :  { %408 = vmatprep.subr.bf16.mxu0 %v1468_v36  ;;  %v1894_v36 = vld [vmem:[#allocation8 + $0xa4] ss:$8 sps:$4 sm:$0xff]  }
  0x7e   :  { %770 = vmatpush1.bf16.msra.mxu1 %v1536_v60 }
  0x7f   :  { %409 = vmatpush1.bf16.msra.mxu0 %v1470_v39  ;;  %771 = vmatprep.subr.bf16.mxu1 %v1537_v61  ;;  %v1903_v39 = vld [vmem:[#allocation8 + $0xb0] ss:$8 sps:$4 sm:$0xff]  }
  0x80   :  { %410 = vmatprep.subr.bf16.mxu0 %v1471_v40  ;;  %v1906_v40 = vld [vmem:[#allocation8 + $0xc4] ss:$8 sps:$4 sm:$0xff]  }
  0x82   :  { %772 = vmatpush1.bf16.msra.mxu1 %v1539_v0 }
  0x83   :  { %411 = vmatpush1.bf16.msra.mxu0 %v1473_v43  ;;  %773 = vmatprep.subr.bf16.mxu1 %v1540_v1  ;;  %v1912_v43 = vld [vmem:[#allocation8 + $0xd4] ss:$8 sps:$4 sm:$0xff]  }
  0x84   :  { %412 = vmatprep.subr.bf16.mxu0 %v1474_v45  ;;  %v1915_v45 = vld [vmem:[#allocation8 + $0xd0] ss:$8 sps:$4 sm:$0xff]  }
  0x86   :  { %774 = vmatpush1.bf16.msra.mxu1 %v1542_v11 }
  0x87   :  { %413 = vmatpush1.bf16.msra.mxu0 %v1476_v47  ;;  %775 = vmatprep.subr.bf16.mxu1 %v1543_v12  ;;  %v130_v47 = vld [vmem:[%s2087_s2] sm:$0x3] }
  0x88   :  { %1112 = vmatprep.subr.bf16.mxu0 %v1551_v17  ;;  %v1927_v49 = vrot.slane %v130_v47, %v1918_v46 }
  0x8a   :  { %415 = vmatmul.mubr.bf16.vlgmr.msra.gmra.mrb[0].mxu0 %v1477_v50  ;;  %776 = vmatpush1.bf16.msra.mxu1 %v1545_v13  ;;  %v1930_v50 = vrot.slane %v130_v47, %v1923_v48 }
  0x8b   :  { %424 = vmatprep.mubr.bf16.mxu0 %v1480_v51  ;;  %777 = vmatprep.subr.bf16.mxu1 %v1546_v14 }
  0x8c   :  { %1113 = vmatpush1.bf16.msra.mxu0 %v1838_v16 }
  0x8d   :  { %1114 = vmatprep.subr.bf16.mxu0 %v1840_v18 }
  0x8e   :  { %778 = vmatpush1.bf16.msra.mxu1 %v1548_v15 }
  0x8f   :  { %1388 = vmatprep.subr.bf16.mxu1 %v1551_v17 }
  0x90   :  { %1115 = vmatpush1.bf16.msra.mxu0 %v1843_v19 }
  0x91   :  { %1116 = vmatprep.subr.bf16.mxu0 %v1846_v20 }
  0x92   :  { %425 = vmatmul.mubr.bf16.gmra.mrb[4].mxu0 %v1482_v56 }
  0x93   :  { %434 = vmatprep.mubr.bf16.mxu0 %v1483_v57 }
  0x94   :  { %1117 = vmatpush1.bf16.msra.mxu0 %v1849_v21 }
  0x95   :  { %1118 = vmatprep.subr.bf16.mxu0 %v1852_v22 }
  0x98   :  { %1119 = vmatpush1.bf16.msra.mxu0 %v1855_v23 }
  0x99   :  { %1120 = vmatprep.subr.bf16.mxu0 %v1858_v24 }
  0x9a   :  { %435 = vmatmul.mubr.bf16.gmra.mrb[8].mxu0 %v1485_v62 }
  0x9b   :  { %444 = vmatprep.mubr.bf16.mxu0 %v1486_v63 }
  0x9c   :  { %1121 = vmatpush1.bf16.msra.mxu0 %v1861_v25 }
  0x9d   :  { %1122 = vmatprep.subr.bf16.mxu0 %v1864_v26 }
  0xa0   :  { %1123 = vmatpush1.bf16.msra.mxu0 %v1867_v27 }
  0xa1   :  { %1124 = vmatprep.subr.bf16.mxu0 %v1870_v28 }
  0xa2   :  { %445 = vmatmul.mubr.bf16.gmra.mrb[12].mxu0 %v1488_v2 }
  0xa3   :  { %454 = vmatprep.mubr.bf16.mxu0 %v1489_v3 }
  0xa4   :  { %1125 = vmatpush1.bf16.msra.mxu0 %v1873_v29 }
  0xa5   :  { %1126 = vmatprep.subr.bf16.mxu0 %v1876_v30 }
  0xa8   :  { %1127 = vmatpush1.bf16.msra.mxu0 %v1879_v31 }
  0xa9   :  { %1128 = vmatprep.subr.bf16.mxu0 %v1882_v32 }
  0xaa   :  { %455 = vmatmul.mubr.bf16.gmra.mrb[16].mxu0 %v1491_v4 }
  0xab   :  { %464 = vmatprep.mubr.bf16.mxu0 %v1492_v5 }
  0xac   :  { %1129 = vmatpush1.bf16.msra.mxu0 %v1885_v33 }
  0xad   :  { %1130 = vmatprep.subr.bf16.mxu0 %v1888_v34 }
  0xb0   :  { %1131 = vmatpush1.bf16.msra.mxu0 %v1891_v35 }
  0xb1   :  { %1132 = vmatprep.subr.bf16.mxu0 %v1894_v36 }
  0xb2   :  { %465 = vmatmul.mubr.bf16.gmra.mrb[20].mxu0 %v1494_v6 }
  0xb3   :  { %474 = vmatprep.mubr.bf16.mxu0 %v1495_v7 }
  0xb4   :  { %1133 = vmatpush1.bf16.msra.mxu0 %v1897_v37 }
  0xb5   :  { %1134 = vmatprep.subr.bf16.mxu0 %v1900_v38 }
  0xb8   :  { %1135 = vmatpush1.bf16.msra.mxu0 %v1903_v39 }
  0xb9   :  { %1136 = vmatprep.subr.bf16.mxu0 %v1906_v40 }
  0xba   :  { %475 = vmatmul.mubr.bf16.gmra.mrb[24].mxu0 %v1497_v8 }
  0xbb   :  { %484 = vmatprep.mubr.bf16.mxu0 %v1498_v9 }
  0xbc   :  { %1137 = vmatpush1.bf16.msra.mxu0 %v1909_v42 }
  0xbd   :  { %1138 = vmatprep.subr.bf16.mxu0 %v1912_v43 }
  0xc0   :  { %1139 = vmatpush1.bf16.msra.mxu0 %v1915_v45 }
  0xc2   :  { %485 = vmatmul.mubr.bf16.gmra.mrb[28].mxu0 %v1500_v10 }
 0x15d   :  { %v416_v51 = vpop.f32.mrb[0].mxu0 }
 0x15e   :  { %v417_v52 = vadd.f32 %v416_v51, %v1927_v49  ;;  %v418_v53 = vpop.f32.mrb[1].mxu0 }
 0x15f   :  { %v419_v54 = vadd.f32 %v418_v53, %v1930_v50  ;;  %v420_v55 = vpop.f32.mrb[2].mxu0 }
 0x160   :  { %v421_v56 = vadd.f32 %v420_v55, %v1927_v49  ;;  %v422_v57 = vpop.f32.mrb[3].mxu0  ;;  %v495_v59 = vmax.f32 %v417_v52, 0.0 }
 0x161   :  { %v423_v58 = vadd.f32 %v422_v57, %v1930_v50  ;;  %v496_v61 = vmax.f32 %v419_v54, 0.0 }
 0x162   :  { %v497_v60 = vmax.f32 %v421_v56, 0.0 }
 0x163   :  { %v498_v62 = vmax.f32 %v423_v58, 0.0 }
 0x164   :  { %v527_v63 = vpack.c.bf16 %v497_v60, %v495_v59 }
 0x165   :  { %v426_v0 = vpop.f32.mrb[4].mxu0  ;;  %v528_v1 = vpack.c.bf16 %v498_v62, %v496_v61 }
 0x166   :  { %v427_v2 = vadd.f32 %v426_v0, %v1927_v49  ;;  %v428_v3 = vpop.f32.mrb[5].mxu0 }
 0x167   :  { %v429_v4 = vadd.f32 %v428_v3, %v1930_v50  ;;  %v430_v5 = vpop.f32.mrb[6].mxu0  ;;  %779 = vmatprep.mubr.bf16.mxu1 %v528_v1 }
 0x168   :  { %v431_v6 = vadd.f32 %v430_v5, %v1927_v49  ;;  %v432_v7 = vpop.f32.mrb[7].mxu0  ;;  %780 = vmatmul.mubr.bf16.vlgmr.msra.gmra.mrb[0].mxu1 %v527_v63  ;;  %v499_v9 = vmax.f32 %v427_v2, 0.0 }
 0x169   :  { %v433_v8 = vadd.f32 %v432_v7, %v1930_v50  ;;  %1404 = vmatpush1.bf16.msra.mxu1 %v1838_v16  ;;  %v500_v11 = vmax.f32 %v429_v4, 0.0 }
 0x16a   :  { %v501_v10 = vmax.f32 %v431_v6, 0.0  ;;  %1389 = vmatprep.subr.bf16.mxu1 %v1840_v18 }
 0x16b   :  { %v502_v12 = vmax.f32 %v433_v8, 0.0 }
 0x16c   :  { %v529_v13 = vpack.c.bf16 %v501_v10, %v499_v9 }
 0x16d   :  { %v530_v14 = vpack.c.bf16 %v502_v12, %v500_v11  ;;  %v436_v15 = vpop.f32.mrb[8].mxu0  ;;  %1405 = vmatpush1.bf16.msra.mxu1 %v1843_v19 }
 0x16e   :  { %v437_v17 = vadd.f32 %v436_v15, %v1927_v49  ;;  %v438_v41 = vpop.f32.mrb[9].mxu0  ;;  %1390 = vmatprep.subr.bf16.mxu1 %v1846_v20 }
 0x16f   :  { %v439_v44 = vadd.f32 %v438_v41, %v1930_v50  ;;  %v440_v47 = vpop.f32.mrb[10].mxu0  ;;  %789 = vmatprep.mubr.bf16.mxu1 %v530_v14 }
 0x170   :  { %v441_v16 = vadd.f32 %v440_v47, %v1927_v49  ;;  %v442_v51 = vpop.f32.mrb[11].mxu0  ;;  %790 = vmatmul.mubr.bf16.gmra.mrb[4].mxu1 %v529_v13  ;;  %v503_v52 = vmax.f32 %v437_v17, 0.0 }
 0x171   :  { %v443_v18 = vadd.f32 %v442_v51, %v1930_v50  ;;  %1406 = vmatpush1.bf16.msra.mxu1 %v1849_v21  ;;  %v504_v19 = vmax.f32 %v439_v44, 0.0 }
 0x172   :  { %v505_v53 = vmax.f32 %v441_v16, 0.0  ;;  %1391 = vmatprep.subr.bf16.mxu1 %v1852_v22 }
 0x173   :  { %v506_v54 = vmax.f32 %v443_v18, 0.0 }
 0x174   :  { %v531_v55 = vpack.c.bf16 %v505_v53, %v503_v52 }
 0x175   :  { %v532_v20 = vpack.c.bf16 %v506_v54, %v504_v19  ;;  %v446_v56 = vpop.f32.mrb[12].mxu0  ;;  %1407 = vmatpush1.bf16.msra.mxu1 %v1855_v23 }
 0x176   :  { %v447_v57 = vadd.f32 %v446_v56, %v1927_v49  ;;  %v448_v58 = vpop.f32.mrb[13].mxu0  ;;  %1392 = vmatprep.subr.bf16.mxu1 %v1858_v24 }
 0x177   :  { %v449_v59 = vadd.f32 %v448_v58, %v1930_v50  ;;  %v450_v60 = vpop.f32.mrb[14].mxu0  ;;  %799 = vmatprep.mubr.bf16.mxu1 %v532_v20 }
 0x178   :  { %v451_v21 = vadd.f32 %v450_v60, %v1927_v49  ;;  %v452_v61 = vpop.f32.mrb[15].mxu0  ;;  %800 = vmatmul.mubr.bf16.gmra.mrb[8].mxu1 %v531_v55  ;;  %v507_v62 = vmax.f32 %v447_v57, 0.0 }
 0x179   :  { %v453_v22 = vadd.f32 %v452_v61, %v1930_v50  ;;  %1408 = vmatpush1.bf16.msra.mxu1 %v1861_v25  ;;  %v508_v23 = vmax.f32 %v449_v59, 0.0 }
 0x17a   :  { %v509_v63 = vmax.f32 %v451_v21, 0.0  ;;  %1393 = vmatprep.subr.bf16.mxu1 %v1864_v26 }
 0x17b   :  { %v510_v0 = vmax.f32 %v453_v22, 0.0 }
 0x17c   :  { %v533_v1 = vpack.c.bf16 %v509_v63, %v507_v62 }
 0x17d   :  { %v534_v24 = vpack.c.bf16 %v510_v0, %v508_v23  ;;  %v456_v2 = vpop.f32.mrb[16].mxu0  ;;  %1409 = vmatpush1.bf16.msra.mxu1 %v1867_v27 }
 0x17e   :  { %v457_v3 = vadd.f32 %v456_v2, %v1927_v49  ;;  %v458_v4 = vpop.f32.mrb[17].mxu0  ;;  %1394 = vmatprep.subr.bf16.mxu1 %v1870_v28 }
 0x17f   :  { %v459_v5 = vadd.f32 %v458_v4, %v1930_v50  ;;  %v460_v6 = vpop.f32.mrb[18].mxu0  ;;  %809 = vmatprep.mubr.bf16.mxu1 %v534_v24  ;;  %v1593_v24 = vld [vmem:[#allocation8 + $0xe4] ss:$8 sps:$4 sm:$0xff]  }
 0x180   :  { %v461_v25 = vadd.f32 %v460_v6, %v1927_v49  ;;  %v462_v7 = vpop.f32.mrb[19].mxu0  ;;  %810 = vmatmul.mubr.bf16.gmra.mrb[12].mxu1 %v533_v1  ;;  %v511_v8 = vmax.f32 %v457_v3, 0.0  ;;  %1140 = vmatprep.subr.bf16.mxu0 %v1593_v24 }
 0x181   :  { %v463_v26 = vadd.f32 %v462_v7, %v1930_v50  ;;  %1410 = vmatpush1.bf16.msra.mxu1 %v1873_v29  ;;  %v512_v27 = vmax.f32 %v459_v5, 0.0 }
 0x182   :  { %v513_v9 = vmax.f32 %v461_v25, 0.0  ;;  %1395 = vmatprep.subr.bf16.mxu1 %v1876_v30 }
 0x183   :  { %v514_v10 = vmax.f32 %v463_v26, 0.0 }
 0x184   :  { %v535_v11 = vpack.c.bf16 %v513_v9, %v511_v8 }
 0x185   :  { %v536_v28 = vpack.c.bf16 %v514_v10, %v512_v27  ;;  %v466_v12 = vpop.f32.mrb[20].mxu0  ;;  %1411 = vmatpush1.bf16.msra.mxu1 %v1879_v31 }
 0x186   :  { %v467_v13 = vadd.f32 %v466_v12, %v1927_v49  ;;  %v468_v14 = vpop.f32.mrb[21].mxu0  ;;  %1396 = vmatprep.subr.bf16.mxu1 %v1882_v32 }
 0x187   :  { %v469_v15 = vadd.f32 %v468_v14, %v1930_v50  ;;  %v470_v17 = vpop.f32.mrb[22].mxu0  ;;  %819 = vmatprep.mubr.bf16.mxu1 %v536_v28 }
 0x188   :  { %v471_v29 = vadd.f32 %v470_v17, %v1927_v49  ;;  %v472_v41 = vpop.f32.mrb[23].mxu0  ;;  %820 = vmatmul.mubr.bf16.gmra.mrb[16].mxu1 %v535_v11  ;;  %v515_v44 = vmax.f32 %v467_v13, 0.0 }
 0x189   :  { %v473_v30 = vadd.f32 %v472_v41, %v1930_v50  ;;  %1412 = vmatpush1.bf16.msra.mxu1 %v1885_v33  ;;  %v516_v31 = vmax.f32 %v469_v15, 0.0 }
 0x18a   :  { %v517_v47 = vmax.f32 %v471_v29, 0.0  ;;  %1397 = vmatprep.subr.bf16.mxu1 %v1888_v34 }
 0x18b   :  { %v518_v16 = vmax.f32 %v473_v30, 0.0 }
 0x18c   :  { %v537_v51 = vpack.c.bf16 %v517_v47, %v515_v44 }
 0x18d   :  { %v538_v32 = vpack.c.bf16 %v518_v16, %v516_v31  ;;  %v476_v18 = vpop.f32.mrb[24].mxu0  ;;  %1413 = vmatpush1.bf16.msra.mxu1 %v1891_v35 }
 0x18e   :  { %v477_v52 = vadd.f32 %v476_v18, %v1927_v49  ;;  %v478_v53 = vpop.f32.mrb[25].mxu0  ;;  %1398 = vmatprep.subr.bf16.mxu1 %v1894_v36 }
 0x18f   :  { %v479_v19 = vadd.f32 %v478_v53, %v1930_v50  ;;  %v480_v54 = vpop.f32.mrb[26].mxu0  ;;  %829 = vmatprep.mubr.bf16.mxu1 %v538_v32 }
 0x190   :  { %v481_v33 = vadd.f32 %v480_v54, %v1927_v49  ;;  %v482_v55 = vpop.f32.mrb[27].mxu0  ;;  %830 = vmatmul.mubr.bf16.gmra.mrb[20].mxu1 %v537_v51  ;;  %v519_v20 = vmax.f32 %v477_v52, 0.0 }
 0x191   :  { %v483_v34 = vadd.f32 %v482_v55, %v1930_v50  ;;  %1414 = vmatpush1.bf16.msra.mxu1 %v1897_v37  ;;  %v520_v35 = vmax.f32 %v479_v19, 0.0 }
 0x192   :  { %v521_v56 = vmax.f32 %v481_v33, 0.0  ;;  %1399 = vmatprep.subr.bf16.mxu1 %v1900_v38 }
 0x193   :  { %v522_v57 = vmax.f32 %v483_v34, 0.0 }
 0x194   :  { %v539_v58 = vpack.c.bf16 %v521_v56, %v519_v20 }
 0x195   :  { %v540_v36 = vpack.c.bf16 %v522_v57, %v520_v35  ;;  %v486_v59 = vpop.f32.mrb[28].mxu0  ;;  %1415 = vmatpush1.bf16.msra.mxu1 %v1903_v39 }
 0x196   :  { %v487_v60 = vadd.f32 %v486_v59, %v1927_v49  ;;  %v488_v21 = vpop.f32.mrb[29].mxu0  ;;  %1400 = vmatprep.subr.bf16.mxu1 %v1906_v40 }
 0x197   :  { %v489_v61 = vadd.f32 %v488_v21, %v1930_v50  ;;  %v490_v22 = vpop.f32.mrb[30].mxu0  ;;  %839 = vmatprep.mubr.bf16.mxu1 %v540_v36 }
 0x198   :  { %v491_v37 = vadd.f32 %v490_v22, %v1927_v49  ;;  %v492_v62 = vpop.f32.mrb[31].mxu0  ;;  %840 = vmatmul.mubr.bf16.gmra.mrb[24].mxu1 %v539_v58  ;;  %v523_v63 = vmax.f32 %v487_v60, 0.0  ;;  %v1591_v49 = vld [vmem:[#allocation8 + $0xe0] ss:$8 sps:$4 sm:$0xff]  }
 0x199   :  { %v493_v38 = vadd.f32 %v492_v62, %v1930_v50  ;;  %1416 = vmatpush1.bf16.msra.mxu1 %v1909_v42  ;;  %v524_v39 = vmax.f32 %v489_v61, 0.0  ;;  %1141 = vmatpush1.bf16.msra.mxu0 %v1591_v49  ;;  %v1596_v50 = vld [vmem:[#allocation8 + $0xf4] ss:$8 sps:$4 sm:$0xff]   ;;  %v1594_v42 = vld [vmem:[#allocation8 + $0xf0] ss:$8 sps:$4 sm:$0xff]  }
 0x19a   :  { %v525_v23 = vmax.f32 %v491_v37, 0.0  ;;  %1401 = vmatprep.subr.bf16.mxu1 %v1912_v43  ;;  %1142 = vmatprep.subr.bf16.mxu0 %v1596_v50  ;;  %v575_v43 = vld [vmem:[%s2089_s4] sm:$0x3] }
 0x19b   :  { %v526_v0 = vmax.f32 %v493_v38, 0.0  ;;  %v1998_v2 = vrot.slane %v575_v43, %v1923_v48 }
 0x19c   :  { %v541_v1 = vpack.c.bf16 %v525_v23, %v523_v63 }
 0x19d   :  { %v542_v40 = vpack.c.bf16 %v526_v0, %v524_v39  ;;  %1417 = vmatpush1.bf16.msra.mxu1 %v1915_v45  ;;  %1143 = vmatpush1.bf16.msra.mxu0 %v1594_v42  ;;  %v1995_v45 = vrot.slane %v575_v43, %v1918_v46 }
 0x19e   :  { %1402 = vmatprep.subr.bf16.mxu1 %v1593_v24 }
 0x19f   :  { %849 = vmatprep.mubr.bf16.mxu1 %v542_v40 }
 0x1a0   :  { %850 = vmatmul.mubr.bf16.gmra.mrb[28].mxu1 %v541_v1 }
 0x1a1   :  { %1418 = vmatpush1.bf16.msra.mxu1 %v1591_v49 }
 0x1a2   :  { %1403 = vmatprep.subr.bf16.mxu1 %v1596_v50 }
 0x1a5   :  { %1419 = vmatpush1.bf16.msra.mxu1 %v1594_v42 }
 0x23b   :  { %v781_v3 = vpop.f32.mrb[0].mxu1 }
 0x23c   :  { %v782_v4 = vadd.f32 %v781_v3, %v1995_v45  ;;  %v783_v5 = vpop.f32.mrb[1].mxu1 }
 0x23d   :  { %v784_v6 = vadd.f32 %v783_v5, %v1998_v2  ;;  %v785_v25 = vpop.f32.mrb[2].mxu1 }
 0x23e   :  { %v786_v7 = vadd.f32 %v785_v25, %v1995_v45  ;;  %v787_v26 = vpop.f32.mrb[3].mxu1  ;;  %v860_v9 = vmax.f32 %v782_v4, 0.0 }
 0x23f   :  { %v788_v8 = vadd.f32 %v787_v26, %v1998_v2  ;;  %v861_v10 = vmax.f32 %v784_v6, 0.0 }
 0x240   :  { %v862_v27 = vmax.f32 %v786_v7, 0.0 }
 0x241   :  { %v863_v11 = vmax.f32 %v788_v8, 0.0 }
 0x242   :  { %v892_v28 = vpack.c.bf16 %v862_v27, %v860_v9 }
 0x243   :  { %v893_v12 = vpack.c.bf16 %v863_v11, %v861_v10  ;;  %v791_v13 = vpop.f32.mrb[4].mxu1 }
 0x244   :  { %v792_v14 = vadd.f32 %v791_v13, %v1995_v45  ;;  %v793_v15 = vpop.f32.mrb[5].mxu1 }
 0x245   :  { %v794_v17 = vadd.f32 %v793_v15, %v1998_v2  ;;  %v795_v29 = vpop.f32.mrb[6].mxu1  ;;  %1144 = vmatprep.mubr.bf16.mxu0 %v893_v12 }
 0x246   :  { %v796_v41 = vadd.f32 %v795_v29, %v1995_v45  ;;  %v797_v30 = vpop.f32.mrb[7].mxu1  ;;  %1145 = vmatmul.mubr.bf16.vlgmr.msra.gmra.mrb[32].mxu0 %v892_v28  ;;  %v864_v47 = vmax.f32 %v792_v14, 0.0 }
 0x247   :  { %v798_v44 = vadd.f32 %v797_v30, %v1998_v2  ;;  %v865_v16 = vmax.f32 %v794_v17, 0.0 }
 0x248   :  { %v866_v31 = vmax.f32 %v796_v41, 0.0 }
 0x249   :  { %v867_v51 = vmax.f32 %v798_v44, 0.0 }
 0x24a   :  { %v894_v32 = vpack.c.bf16 %v866_v31, %v864_v47 }
 0x24b   :  { %v895_v18 = vpack.c.bf16 %v867_v51, %v865_v16  ;;  %v801_v52 = vpop.f32.mrb[8].mxu1 }
 0x24c   :  { %v802_v53 = vadd.f32 %v801_v52, %v1995_v45  ;;  %v803_v19 = vpop.f32.mrb[9].mxu1 }
 0x24d   :  { %v804_v54 = vadd.f32 %v803_v19, %v1998_v2  ;;  %v805_v33 = vpop.f32.mrb[10].mxu1  ;;  %1154 = vmatprep.mubr.bf16.mxu0 %v895_v18 }
 0x24e   :  { %v806_v55 = vadd.f32 %v805_v33, %v1995_v45  ;;  %v807_v34 = vpop.f32.mrb[11].mxu1  ;;  %1155 = vmatmul.mubr.bf16.gmra.mrb[36].mxu0 %v894_v32  ;;  %v868_v56 = vmax.f32 %v802_v53, 0.0 }
 0x24f   :  { %v808_v20 = vadd.f32 %v807_v34, %v1998_v2  ;;  %v869_v57 = vmax.f32 %v804_v54, 0.0 }
 0x250   :  { %v870_v35 = vmax.f32 %v806_v55, 0.0 }
 0x251   :  { %v871_v58 = vmax.f32 %v808_v20, 0.0 }
 0x252   :  { %v896_v36 = vpack.c.bf16 %v870_v35, %v868_v56 }
 0x253   :  { %v897_v59 = vpack.c.bf16 %v871_v58, %v869_v57  ;;  %v811_v60 = vpop.f32.mrb[12].mxu1 }
 0x254   :  { %v812_v21 = vadd.f32 %v811_v60, %v1995_v45  ;;  %v813_v61 = vpop.f32.mrb[13].mxu1 }
 0x255   :  { %v814_v22 = vadd.f32 %v813_v61, %v1998_v2  ;;  %v815_v37 = vpop.f32.mrb[14].mxu1  ;;  %1164 = vmatprep.mubr.bf16.mxu0 %v897_v59 }
 0x256   :  { %v816_v62 = vadd.f32 %v815_v37, %v1995_v45  ;;  %v817_v38 = vpop.f32.mrb[15].mxu1  ;;  %1165 = vmatmul.mubr.bf16.gmra.mrb[40].mxu0 %v896_v36  ;;  %v872_v23 = vmax.f32 %v812_v21, 0.0 }
 0x257   :  { %v818_v63 = vadd.f32 %v817_v38, %v1998_v2  ;;  %v873_v0 = vmax.f32 %v814_v22, 0.0 }
 0x258   :  { %v874_v39 = vmax.f32 %v816_v62, 0.0 }
 0x259   :  { %v875_v1 = vmax.f32 %v818_v63, 0.0 }
 0x25a   :  { %v898_v40 = vpack.c.bf16 %v874_v39, %v872_v23 }
 0x25b   :  { %v899_v24 = vpack.c.bf16 %v875_v1, %v873_v0  ;;  %v821_v49 = vpop.f32.mrb[16].mxu1  ;;  %v940_v0 = vld [vmem:[%s2091_s6] sm:$0x3]  ;;  %s1721_s6 = smov [#allocation10]  }
 0x25c   :  { %v822_v50 = vadd.f32 %v821_v49, %v1995_v45  ;;  %v823_v42 = vpop.f32.mrb[17].mxu1  ;;  %v2036_v1 = vrot.slane %v940_v0, %v1918_v46  ;;  %s1262_s28 = sshll.u32 %s1721_s6, 4  ;;  %s1263_s28 = int_to_ptr.vmem [resolvable:$true] %s1262_s28 }
 0x25d   :  { %v824_v43 = vadd.f32 %v823_v42, %v1998_v2  ;;  %v825_v3 = vpop.f32.mrb[18].mxu1  ;;  %1174 = vmatprep.mubr.bf16.mxu0 %v899_v24  ;;  %s1685_s29 = scalar_lea.vmem %s1263_s28, 4096  ;;  %p1690_p5 = scmp.lt.s32.totalorder %s1263_s28, %s1263_s28 }
 0x25e   :  { %v826_v4 = vadd.f32 %v825_v3, %v1995_v45  ;;  %v827_v5 = vpop.f32.mrb[19].mxu1  ;;  %1175 = vmatmul.mubr.bf16.gmra.mrb[44].mxu0 %v898_v40  ;;  %v876_v25 = vmax.f32 %v822_v50, 0.0  ;;  %p1686_p4 = scmp.ne.s32.totalorder %s1263_s28, %s1685_s29  ;;  %p1691_p6 = scmp.lt.s32.totalorder %s1685_s29, %s1685_s29 }
 0x25f   :  { %v828_v6 = vadd.f32 %v827_v5, %v1998_v2  ;;  %v877_v26 = vmax.f32 %v824_v43, 0.0 }
 0x260   :  { %v878_v7 = vmax.f32 %v826_v4, 0.0  ;;  %p1692_p7 = por %p1691_p6, %p1690_p5 }
 0x261   :  { %v879_v8 = vmax.f32 %v828_v6, 0.0 }
 0x262   :  { %v900_v9 = vpack.c.bf16 %v878_v7, %v876_v25  ;;  %p1693_p8 = pnand %p1692_p7, %p1686_p4 }
 0x263   :  { %v901_v27 = vpack.c.bf16 %v879_v8, %v877_v26  ;;  %v831_v10 = vpop.f32.mrb[20].mxu1 }
 0x264   :  { %v832_v11 = vadd.f32 %v831_v10, %v1995_v45  ;;  %v833_v28 = vpop.f32.mrb[21].mxu1 }
 0x265   :  { %v834_v12 = vadd.f32 %v833_v28, %v1998_v2  ;;  %v835_v13 = vpop.f32.mrb[22].mxu1  ;;  %1184 = vmatprep.mubr.bf16.mxu1 %v901_v27 }
 0x266   :  { %v836_v14 = vadd.f32 %v835_v13, %v1995_v45  ;;  %v837_v15 = vpop.f32.mrb[23].mxu1  ;;  %1185 = vmatmul.mubr.bf16.vlgmr.msra.gmra.mrb[32].mxu1 %v900_v9  ;;  %v880_v29 = vmax.f32 %v832_v11, 0.0 }
 0x267   :  { %v838_v17 = vadd.f32 %v837_v15, %v1998_v2  ;;  %v881_v30 = vmax.f32 %v834_v12, 0.0 }
 0x268   :  { %v882_v41 = vmax.f32 %v836_v14, 0.0 }
 0x269   :  { %v883_v44 = vmax.f32 %v838_v17, 0.0 }
 0x26a   :  { %v902_v47 = vpack.c.bf16 %v882_v41, %v880_v29 }
 0x26b   :  { %v903_v31 = vpack.c.bf16 %v883_v44, %v881_v30  ;;  %v841_v16 = vpop.f32.mrb[24].mxu1 }
 0x26c   :  { %v842_v51 = vadd.f32 %v841_v16, %v1995_v45  ;;  %v843_v32 = vpop.f32.mrb[25].mxu1 }
 0x26d   :  { %v844_v18 = vadd.f32 %v843_v32, %v1998_v2  ;;  %v845_v52 = vpop.f32.mrb[26].mxu1  ;;  %1194 = vmatprep.mubr.bf16.mxu1 %v903_v31 }
 0x26e   :  { %v846_v53 = vadd.f32 %v845_v52, %v1995_v45  ;;  %v847_v19 = vpop.f32.mrb[27].mxu1  ;;  %1195 = vmatmul.mubr.bf16.gmra.mrb[36].mxu1 %v902_v47  ;;  %v884_v33 = vmax.f32 %v842_v51, 0.0 }
 0x26f   :  { %v848_v54 = vadd.f32 %v847_v19, %v1998_v2  ;;  %v885_v34 = vmax.f32 %v844_v18, 0.0 }
 0x270   :  { %v886_v55 = vmax.f32 %v846_v53, 0.0 }
 0x271   :  { %v887_v20 = vmax.f32 %v848_v54, 0.0 }
 0x272   :  { %v904_v56 = vpack.c.bf16 %v886_v55, %v884_v33 }
 0x273   :  { %v905_v35 = vpack.c.bf16 %v887_v20, %v885_v34  ;;  %v851_v57 = vpop.f32.mrb[28].mxu1 }
 0x274   :  { %v852_v58 = vadd.f32 %v851_v57, %v1995_v45  ;;  %v853_v36 = vpop.f32.mrb[29].mxu1 }
 0x275   :  { %v854_v59 = vadd.f32 %v853_v36, %v1998_v2  ;;  %v855_v60 = vpop.f32.mrb[30].mxu1  ;;  %1204 = vmatprep.mubr.bf16.mxu1 %v905_v35 }
 0x276   :  { %v856_v21 = vadd.f32 %v855_v60, %v1995_v45  ;;  %v857_v61 = vpop.f32.mrb[31].mxu1  ;;  %1205 = vmatmul.mubr.bf16.gmra.mrb[40].mxu1 %v904_v56  ;;  %v888_v37 = vmax.f32 %v852_v58, 0.0  ;;  %v2039_v45 = vrot.slane %v940_v0, %v1923_v48 }
 0x277   :  { %v858_v22 = vadd.f32 %v857_v61, %v1998_v2  ;;  %v889_v38 = vmax.f32 %v854_v59, 0.0 }
 0x278   :  { %v890_v62 = vmax.f32 %v856_v21, 0.0 }
 0x279   :  { %v891_v63 = vmax.f32 %v858_v22, 0.0 }
 0x27a   :  { %v906_v23 = vpack.c.bf16 %v890_v62, %v888_v37 }
 0x27b   :  { %v907_v39 = vpack.c.bf16 %v891_v63, %v889_v38 }
 0x27d   :  { %1214 = vmatprep.mubr.bf16.mxu1 %v907_v39 }
 0x27e   :  { %1215 = vmatmul.mubr.bf16.gmra.mrb[44].mxu1 %v906_v23 }
 0x319   :  { %v1146_v40 = vpop.f32.mrb[32].mxu0 }
 0x31a   :  { %v1147_v2 = vadd.f32 %v1146_v40, %v2036_v1  ;;  %v1148_v24 = vpop.f32.mrb[33].mxu0 }
 0x31b   :  { %v1149_v49 = vadd.f32 %v1148_v24, %v2039_v45  ;;  %v1150_v50 = vpop.f32.mrb[34].mxu0 }
 0x31c   :  { %1225 = vst [vmem:[#allocation10] sm:$0xff] %v1147_v2  ;;  %v1151_v42 = vadd.f32 %v1150_v50, %v2036_v1  ;;  %v1152_v43 = vpop.f32.mrb[35].mxu0 }
 0x31d   :  { %1226 = vst [vmem:[#allocation10 + $0x8] sm:$0xff] %v1149_v49  ;;  %v1153_v3 = vadd.f32 %v1152_v43, %v2039_v45 }
 0x31e   :  { %1227 = vst [vmem:[#allocation10 + $0x10] sm:$0xff] %v1151_v42 }
 0x31f   :  { %1228 = vst [vmem:[#allocation10 + $0x18] sm:$0xff] %v1153_v3 }
 0x321   :  { %v1156_v46 = vpop.f32.mrb[36].mxu0 }
 0x322   :  { %v1157_v48 = vadd.f32 %v1156_v46, %v2036_v1  ;;  %v1158_v4 = vpop.f32.mrb[37].mxu0 }
 0x323   :  { %v1159_v5 = vadd.f32 %v1158_v4, %v2039_v45  ;;  %v1160_v6 = vpop.f32.mrb[38].mxu0 }
 0x324   :  { %1229 = vst [vmem:[#allocation10 + $0x20] sm:$0xff] %v1157_v48  ;;  %v1161_v25 = vadd.f32 %v1160_v6, %v2036_v1  ;;  %v1162_v7 = vpop.f32.mrb[39].mxu0 }
 0x325   :  { %1230 = vst [vmem:[#allocation10 + $0x28] sm:$0xff] %v1159_v5  ;;  %v1163_v26 = vadd.f32 %v1162_v7, %v2039_v45 }
 0x326   :  { %1231 = vst [vmem:[#allocation10 + $0x30] sm:$0xff] %v1161_v25 }
 0x327   :  { %1232 = vst [vmem:[#allocation10 + $0x38] sm:$0xff] %v1163_v26 }
 0x329   :  { %v1166_v8 = vpop.f32.mrb[40].mxu0 }
 0x32a   :  { %v1167_v9 = vadd.f32 %v1166_v8, %v2036_v1  ;;  %v1168_v27 = vpop.f32.mrb[41].mxu0 }
 0x32b   :  { %v1169_v10 = vadd.f32 %v1168_v27, %v2039_v45  ;;  %v1170_v11 = vpop.f32.mrb[42].mxu0 }
 0x32c   :  { %1233 = vst [vmem:[#allocation10 + $0x40] sm:$0xff] %v1167_v9  ;;  %v1171_v28 = vadd.f32 %v1170_v11, %v2036_v1  ;;  %v1172_v12 = vpop.f32.mrb[43].mxu0 }
 0x32d   :  { %1234 = vst [vmem:[#allocation10 + $0x48] sm:$0xff] %v1169_v10  ;;  %v1173_v13 = vadd.f32 %v1172_v12, %v2039_v45 }
 0x32e   :  { %1235 = vst [vmem:[#allocation10 + $0x50] sm:$0xff] %v1171_v28 }
 0x32f   :  { %1236 = vst [vmem:[#allocation10 + $0x58] sm:$0xff] %v1173_v13 }
 0x331   :  { %v1176_v14 = vpop.f32.mrb[44].mxu0 }
 0x332   :  { %v1177_v15 = vadd.f32 %v1176_v14, %v2036_v1  ;;  %v1178_v17 = vpop.f32.mrb[45].mxu0 }
 0x333   :  { %v1179_v29 = vadd.f32 %v1178_v17, %v2039_v45  ;;  %v1180_v41 = vpop.f32.mrb[46].mxu0 }
 0x334   :  { %1237 = vst [vmem:[#allocation10 + $0x60] sm:$0xff] %v1177_v15  ;;  %v1181_v30 = vadd.f32 %v1180_v41, %v2036_v1  ;;  %v1182_v44 = vpop.f32.mrb[47].mxu0 }
 0x335   :  { %1238 = vst [vmem:[#allocation10 + $0x68] sm:$0xff] %v1179_v29  ;;  %v1183_v47 = vadd.f32 %v1182_v44, %v2039_v45 }
 0x336   :  { %1239 = vst [vmem:[#allocation10 + $0x70] sm:$0xff] %v1181_v30 }
 0x337   :  { %1240 = vst [vmem:[#allocation10 + $0x78] sm:$0xff] %v1183_v47 }
 0x339   :  { %v1186_v31 = vpop.f32.mrb[32].mxu1 }
 0x33a   :  { %v1187_v16 = vadd.f32 %v1186_v31, %v2036_v1  ;;  %v1188_v51 = vpop.f32.mrb[33].mxu1 }
 0x33b   :  { %v1189_v32 = vadd.f32 %v1188_v51, %v2039_v45  ;;  %v1190_v18 = vpop.f32.mrb[34].mxu1 }
 0x33c   :  { %1241 = vst [vmem:[#allocation10 + $0x80] sm:$0xff] %v1187_v16  ;;  %v1191_v52 = vadd.f32 %v1190_v18, %v2036_v1  ;;  %v1192_v53 = vpop.f32.mrb[35].mxu1 }
 0x33d   :  { %1242 = vst [vmem:[#allocation10 + $0x88] sm:$0xff] %v1189_v32  ;;  %v1193_v19 = vadd.f32 %v1192_v53, %v2039_v45 }
 0x33e   :  { %1243 = vst [vmem:[#allocation10 + $0x90] sm:$0xff] %v1191_v52 }
 0x33f   :  { %1244 = vst [vmem:[#allocation10 + $0x98] sm:$0xff] %v1193_v19 }
 0x341   :  { %v1196_v54 = vpop.f32.mrb[36].mxu1 }
 0x342   :  { %v1197_v33 = vadd.f32 %v1196_v54, %v2036_v1  ;;  %v1198_v55 = vpop.f32.mrb[37].mxu1 }
 0x343   :  { %v1199_v34 = vadd.f32 %v1198_v55, %v2039_v45  ;;  %v1200_v20 = vpop.f32.mrb[38].mxu1 }
 0x344   :  { %1245 = vst [vmem:[#allocation10 + $0xa0] sm:$0xff] %v1197_v33  ;;  %v1201_v56 = vadd.f32 %v1200_v20, %v2036_v1  ;;  %v1202_v35 = vpop.f32.mrb[39].mxu1 }
 0x345   :  { %1246 = vst [vmem:[#allocation10 + $0xa8] sm:$0xff] %v1199_v34  ;;  %v1203_v57 = vadd.f32 %v1202_v35, %v2039_v45 }
 0x346   :  { %1247 = vst [vmem:[#allocation10 + $0xb0] sm:$0xff] %v1201_v56 }
 0x347   :  { %1248 = vst [vmem:[#allocation10 + $0xb8] sm:$0xff] %v1203_v57 }
 0x349   :  { %v1206_v58 = vpop.f32.mrb[40].mxu1 }
 0x34a   :  { %v1207_v36 = vadd.f32 %v1206_v58, %v2036_v1  ;;  %v1208_v59 = vpop.f32.mrb[41].mxu1 }
 0x34b   :  { %v1209_v60 = vadd.f32 %v1208_v59, %v2039_v45  ;;  %v1210_v21 = vpop.f32.mrb[42].mxu1 }
 0x34c   :  { %1249 = vst [vmem:[#allocation10 + $0xc0] sm:$0xff] %v1207_v36  ;;  %v1211_v61 = vadd.f32 %v1210_v21, %v2036_v1  ;;  %v1212_v22 = vpop.f32.mrb[43].mxu1 }
 0x34d   :  { %1250 = vst [vmem:[#allocation10 + $0xc8] sm:$0xff] %v1209_v60  ;;  %v1213_v37 = vadd.f32 %v1212_v22, %v2039_v45 }
 0x34e   :  { %1251 = vst [vmem:[#allocation10 + $0xd0] sm:$0xff] %v1211_v61 }
 0x34f   :  { %1252 = vst [vmem:[#allocation10 + $0xd8] sm:$0xff] %v1213_v37 }
 0x351   :  { %v1216_v62 = vpop.f32.mrb[44].mxu1 }
 0x352   :  { %v1217_v38 = vadd.f32 %v1216_v62, %v2036_v1  ;;  %v1218_v63 = vpop.f32.mrb[45].mxu1 }
 0x353   :  { %v1219_v23 = vadd.f32 %v1218_v63, %v2039_v45  ;;  %v1220_v39 = vpop.f32.mrb[46].mxu1 }
 0x354   :  { %1253 = vst [vmem:[#allocation10 + $0xe0] sm:$0xff] %v1217_v38  ;;  %v1221_v0 = vadd.f32 %v1220_v39, %v2036_v1  ;;  %v1222_v40 = vpop.f32.mrb[47].mxu1 }
 0x355   :  { %1254 = vst [vmem:[#allocation10 + $0xe8] sm:$0xff] %v1219_v23  ;;  %v1223_v2 = vadd.f32 %v1222_v40, %v2039_v45 }
 0x356   :  { %1255 = vst [vmem:[#allocation10 + $0xf0] sm:$0xff] %v1221_v0 }
 0x357   :  { %1256 = vst [vmem:[#allocation10 + $0xf8] sm:$0xff] %v1223_v2 }
 0x358   :  { %1696 = shalt.err (!%p1693_p8)
}
 0x359   :  { %s1697_s9 = scalar_lea.hbm %s2092_s7, 4096 }
 0x35a   :  { %p1698_p9 = scmp.ne.s32.totalorder %s2092_s7, %s1697_s9  ;;  %p1701_p10 = scmp.lt.u32.totalorder %s1697_s9, %s2092_s7 }
 0x35c   :  { %p1703_p11 = pnand %p1701_p10, %p1698_p9 }
 0x35e   :  { %1706 = shalt.err (!%p1703_p11)
}
 0x35f   :  { %s1722_s16 = smov 256   ;;  %s1723_s0 = smov 16  }
 0x360   :  { %1268 = dma.vmem_to_hbm [thread:$0]  %s1263_s28, 4096, %s2092_s7, [#allocation4], %s1722_s16, %s1722_s16, %s1723_s0  }
 0x361   :  { %1713 = dma.done.wait [#allocation4], 4096  }
 0x362   :  { %1714 = vsyncadd [#allocation4], 4294963200 }
 0x363   :  { %1272 = vsyncpa [#allocation3], 1 }
 0x364   :  { %1273 = vsyncpa [#allocation6], 1 }
 0x365   :  { %1274 = vsyncpa [#allocation9], 1 }
 0x366   :  { %1275 = vsyncpa [#allocation4], 1 }

// kernel: tpu_custom_call.1
= control target key start
LH: loop header
LB: loop body
LE: loop exit
PB: predicated region body
PF: predicated region fallthrough
CT: control target
= control target key end

     0   :  { %12 = vsyncpa [#allocation3], 0  ;;  %s2085_s0 = inlined_call_operand.hbm [shape: bf16[128,256], index: 0, kind: input, shape index: {}]   ;;  %s2086_s1 = inlined_call_operand.hbm [shape: bf16[256,256], index: 1, kind: input, shape index: {}]   ;;  %s2087_s2 = inlined_call_operand.vmem [shape: f32[1,256], index: 2, kind: input, shape index: {}]   ;;  %s2088_s3 = inlined_call_operand.hbm [shape: bf16[256,256], index: 3, kind: input, shape index: {}]   ;;  %s2089_s4 = inlined_call_operand.vmem [shape: f32[1,256], index: 4, kind: input, shape index: {}]   ;;  %s2090_s5 = inlined_call_operand.hbm [shape: bf16[256,256], index: 5, kind: input, shape index: {}]   ;;  %s2091_s6 = inlined_call_operand.vmem [shape: f32[1,256], index: 6, kind: input, shape index: {}]   ;;  %s2092_s7 = inlined_call_operand.hbm [shape: f32[128,256], index: 7, kind: output, shape index: {}]  }
   0x1   :  { %13 = vsyncpa [#allocation6], 0 }
   0x2   :  { %14 = vsyncpa [#allocation9], 0 }
   0x3   :  { %15 = vsyncpa [#allocation4], 0  ;;  %s1715_s24 = smov [#allocation5]   ;;  %s1716_s26 = smov [#allocation2]  }
   0x4   :  { %s33_s25 = sshll.u32 %s1715_s24, 4  ;;  %s21_s27 = sshll.u32 %s1716_s26, 4  ;;  %s34_s25 = int_to_ptr.vmem [resolvable:$true] %s33_s25  ;;  %s1764_s27 = int_to_ptr.vmem [resolvable:$true] %s21_s27 }
   0x5   :  { %s1597_s30 = scalar_lea.hbm %s2086_s1, 4096 }
   0x6   :  { %p1598_p0 = scmp.ne.s32.totalorder %s2086_s1, %s1597_s30  ;;  %p1601_p1 = scmp.lt.u32.totalorder %s1597_s30, %s2086_s1 }
   0x8   :  { %p1603_p2 = pnand %p1601_p1, %p1598_p0 }
   0xa   :  { %1606 = shalt.err (!%p1603_p2)
}
   0xb   :  { %s1607_s12 = scalar_lea.vmem %s34_s25, 4096  ;;  %p1612_p4 = scmp.lt.s32.totalorder %s34_s25, %s34_s25 }
   0xc   :  { %p1608_p3 = scmp.ne.s32.totalorder %s34_s25, %s1607_s12  ;;  %p1613_p5 = scmp.lt.s32.totalorder %s1607_s12, %s1607_s12 }
   0xe   :  { %p1614_p6 = por %p1613_p5, %p1612_p4 }
  0x10   :  { %p1615_p7 = pnand %p1614_p6, %p1608_p3 }
  0x12   :  { %1618 = shalt.err (!%p1615_p7)
}
  0x13   :  { %s1717_s13 = smov 128   ;;  %s1718_s14 = smov 8  }
  0x14   :  { %39 = dma.hbm_to_vmem [thread:$0]  %s2086_s1, 4096, %s34_s25, [#allocation6], %s1717_s13, %s1717_s13, %s1718_s14  }
  0x15   :  { %s1619_s19 = scalar_lea.hbm %s2085_s0, 2048 }
  0x16   :  { %p1620_p8 = scmp.ne.s32.totalorder %s2085_s0, %s1619_s19  ;;  %p1623_p9 = scmp.lt.u32.totalorder %s1619_s19, %s2085_s0 }
  0x18   :  { %p1625_p10 = pnand %p1623_p9, %p1620_p8 }
  0x1a   :  { %1628 = shalt.err (!%p1625_p10)
}
  0x1b   :  { %s1629_s24 = scalar_lea.vmem %s1764_s27, 2048  ;;  %p1634_p12 = scmp.lt.s32.totalorder %s1764_s27, %s1764_s27 }
  0x1c   :  { %p1630_p11 = scmp.ne.s32.totalorder %s1764_s27, %s1629_s24  ;;  %p1635_p13 = scmp.lt.s32.totalorder %s1629_s24, %s1629_s24 }
  0x1e   :  { %p1636_p0 = por %p1635_p13, %p1634_p12 }
  0x20   :  { %p1637_p1 = pnand %p1636_p0, %p1630_p11 }
  0x22   :  { %1640 = shalt.err (!%p1637_p1)
}
  0x23   :  { %27 = dma.hbm_to_vmem [thread:$0]  %s2085_s0, 2048, %s1764_s27, [#allocation3], %s1717_s13, %s1717_s13, %s1718_s14  }
  0x24   :  { %s1719_s26 = smov [#allocation7]   ;;  %s1720_s29 = smov [#allocation8]  }
  0x25   :  { %s47_s28 = sshll.u32 %s1719_s26, 4  ;;  %s61_s30 = sshll.u32 %s1720_s29, 4  ;;  %s48_s28 = int_to_ptr.vmem [resolvable:$true] %s47_s28  ;;  %s1801_s30 = int_to_ptr.vmem [resolvable:$true] %s61_s30 }
  0x26   :  { %s1641_s10 = scalar_lea.hbm %s2088_s3, 4096 }
  0x27   :  { %p1642_p2 = scmp.ne.s32.totalorder %s2088_s3, %s1641_s10  ;;  %p1645_p3 = scmp.lt.u32.totalorder %s1641_s10, %s2088_s3 }
  0x29   :  { %p1647_p4 = pnand %p1645_p3, %p1642_p2 }
  0x2b   :  { %1650 = shalt.err (!%p1647_p4)
}
  0x2c   :  { %s1651_s0 = scalar_lea.vmem %s48_s28, 4096  ;;  %p1656_p6 = scmp.lt.s32.totalorder %s48_s28, %s48_s28 }
  0x2d   :  { %p1652_p5 = scmp.ne.s32.totalorder %s48_s28, %s1651_s0  ;;  %p1657_p7 = scmp.lt.s32.totalorder %s1651_s0, %s1651_s0 }
  0x2f   :  { %p1658_p8 = por %p1657_p7, %p1656_p6 }
  0x31   :  { %p1659_p9 = pnand %p1658_p8, %p1652_p5 }
  0x33   :  { %1662 = shalt.err (!%p1659_p9)
}
  0x34   :  { %53 = dma.hbm_to_vmem [thread:$0]  %s2088_s3, 4096, %s48_s28, [#allocation6], %s1717_s13, %s1717_s13, %s1718_s14  }
  0x35   :  { %s1663_s20 = scalar_lea.hbm %s2090_s5, 4096 }
  0x36   :  { %p1664_p10 = scmp.ne.s32.totalorder %s2090_s5, %s1663_s20  ;;  %p1667_p11 = scmp.lt.u32.totalorder %s1663_s20, %s2090_s5 }
  0x38   :  { %p1669_p12 = pnand %p1667_p11, %p1664_p10 }
  0x3a   :  { %1672 = shalt.err (!%p1669_p12)
}
  0x3b   :  { %s1673_s1 = scalar_lea.vmem %s1801_s30, 4096  ;;  %p1678_p0 = scmp.lt.s32.totalorder %s1801_s30, %s1801_s30 }
  0x3c   :  { %p1674_p13 = scmp.ne.s32.totalorder %s1801_s30, %s1673_s1  ;;  %p1679_p1 = scmp.lt.s32.totalorder %s1673_s1, %s1673_s1 }
  0x3e   :  { %p1680_p2 = por %p1679_p1, %p1678_p0 }
  0x40   :  { %p1681_p3 = pnand %p1680_p2, %p1674_p13 }
  0x42   :  { %1684 = shalt.err (!%p1681_p3)
}
  0x43   :  { %67 = dma.hbm_to_vmem [thread:$0]  %s2090_s5, 4096, %s1801_s30, [#allocation9], %s1717_s13, %s1717_s13, %s1718_s14  }
  0x44   :  { %1707 = dma.done.wait [#allocation3], 2048  }
  0x45   :  { %1708 = vsyncadd [#allocation3], 4294965248 }
  0x46   :  { %1709 = dma.done.wait [#allocation6], 8192  }
  0x47   :  { %1710 = vsyncadd [#allocation6], 4294959104 }
  0x48   :  { %1711 = dma.done.wait [#allocation9], 4096  }
  0x49   :  { %1712 = vsyncadd [#allocation9], 4294963200  ;;  %v1429_v0 = vld [vmem:[#allocation5 + $0x4] ss:$8 sps:$4 sm:$0xff]   ;;  %v1431_v1 = vld [vmem:[#allocation5] ss:$8 sps:$4 sm:$0xff]  }
  0x4a   :  { %382 = vmatprep.subr.bf16.mxu0 %v1429_v0  ;;  %v1432_v2 = vld [vmem:[#allocation5 + $0x14] ss:$8 sps:$4 sm:$0xff]   ;;  %v1434_v3 = vld [vmem:[#allocation5 + $0x10] ss:$8 sps:$4 sm:$0xff]   ;;  %v1435_v4 = vld [vmem:[#allocation5 + $0x24] ss:$8 sps:$4 sm:$0xff]  }
  0x4b   :  { %383 = vmatpush1.bf16.msra.mxu0 %v1431_v1  ;;  %v1437_v5 = vld [vmem:[#allocation5 + $0x20] ss:$8 sps:$4 sm:$0xff]   ;;  %v1438_v6 = vld [vmem:[#allocation5 + $0x34] ss:$8 sps:$4 sm:$0xff]   ;;  %v1440_v7 = vld [vmem:[#allocation5 + $0x30] ss:$8 sps:$4 sm:$0xff]  }
  0x4c   :  { %384 = vmatprep.subr.bf16.mxu0 %v1432_v2  ;;  %v1441_v8 = vld [vmem:[#allocation5 + $0x44] ss:$8 sps:$4 sm:$0xff]   ;;  %v1443_v9 = vld [vmem:[#allocation5 + $0x40] ss:$8 sps:$4 sm:$0xff]   ;;  %v1444_v10 = vld [vmem:[#allocation5 + $0x54] ss:$8 sps:$4 sm:$0xff]  }
  0x4d   :  { %v1446_v11 = vld [vmem:[#allocation5 + $0x50] ss:$8 sps:$4 sm:$0xff]   ;;  %v1447_v12 = vld [vmem:[#allocation5 + $0x64] ss:$8 sps:$4 sm:$0xff]   ;;  %v1449_v14 = vld [vmem:[#allocation5 + $0x60] ss:$8 sps:$4 sm:$0xff]  }
  0x4e   :  { %v1479_v13 = vld [vmem:[#allocation2 + $0x4] ss:$8 sps:$4 sm:$0xff]   ;;  %v1450_v15 = vld [vmem:[#allocation5 + $0x74] ss:$8 sps:$4 sm:$0xff]   ;;  %v1452_v16 = vld [vmem:[#allocation5 + $0x70] ss:$8 sps:$4 sm:$0xff]  }
  0x4f   :  { %385 = vmatpush1.bf16.msra.mxu0 %v1434_v3  ;;  %414 = vmatprep.mubr.bf16.mxu0 %v1479_v13  ;;  %v1453_v17 = vld [vmem:[#allocation5 + $0x84] ss:$8 sps:$4 sm:$0xff]   ;;  %v1455_v18 = vld [vmem:[#allocation5 + $0x80] ss:$8 sps:$4 sm:$0xff]   ;;  %v1456_v19 = vld [vmem:[#allocation5 + $0x94] ss:$8 sps:$4 sm:$0xff]  }
  0x50   :  { %386 = vmatprep.subr.bf16.mxu0 %v1435_v4  ;;  %v1501_v20 = vld [vmem:[#allocation7 + $0x4] ss:$8 sps:$4 sm:$0xff]   ;;  %v1503_v21 = vld [vmem:[#allocation7] ss:$8 sps:$4 sm:$0xff]   ;;  %v1458_v22 = vld [vmem:[#allocation5 + $0x90] ss:$8 sps:$4 sm:$0xff]  }
  0x51   :  { %747 = vmatprep.subr.bf16.mxu1 %v1501_v20  ;;  %v1504_v23 = vld [vmem:[#allocation7 + $0x14] ss:$8 sps:$4 sm:$0xff]   ;;  %v1459_v24 = vld [vmem:[#allocation5 + $0xa4] ss:$8 sps:$4 sm:$0xff]   ;;  %v1506_v25 = vld [vmem:[#allocation7 + $0x10] ss:$8 sps:$4 sm:$0xff]  }
  0x52   :  { %748 = vmatpush1.bf16.msra.mxu1 %v1503_v21  ;;  %v1507_v26 = vld [vmem:[#allocation7 + $0x24] ss:$8 sps:$4 sm:$0xff]   ;;  %v1461_v27 = vld [vmem:[#allocation5 + $0xa0] ss:$8 sps:$4 sm:$0xff]   ;;  %v1462_v28 = vld [vmem:[#allocation5 + $0xb4] ss:$8 sps:$4 sm:$0xff]  }
  0x53   :  { %387 = vmatpush1.bf16.msra.mxu0 %v1437_v5  ;;  %749 = vmatprep.subr.bf16.mxu1 %v1504_v23  ;;  %v1509_v29 = vld [vmem:[#allocation7 + $0x20] ss:$8 sps:$4 sm:$0xff]   ;;  %v1510_v30 = vld [vmem:[#allocation7 + $0x34] ss:$8 sps:$4 sm:$0xff]   ;;  %v1464_v31 = vld [vmem:[#allocation5 + $0xb0] ss:$8 sps:$4 sm:$0xff]  }
  0x54   :  { %388 = vmatprep.subr.bf16.mxu0 %v1438_v6  ;;  %v1465_v32 = vld [vmem:[#allocation5 + $0xc4] ss:$8 sps:$4 sm:$0xff]   ;;  %v1512_v33 = vld [vmem:[#allocation7 + $0x30] ss:$8 sps:$4 sm:$0xff]   ;;  %v1467_v35 = vld [vmem:[#allocation5 + $0xc0] ss:$8 sps:$4 sm:$0xff]  }
  0x55   :  { %v1513_v34 = vld [vmem:[#allocation7 + $0x44] ss:$8 sps:$4 sm:$0xff]   ;;  %v1468_v36 = vld [vmem:[#allocation5 + $0xd4] ss:$8 sps:$4 sm:$0xff]   ;;  %v1515_v37 = vld [vmem:[#allocation7 + $0x40] ss:$8 sps:$4 sm:$0xff]  }
  0x56   :  { %750 = vmatpush1.bf16.msra.mxu1 %v1506_v25  ;;  %v1516_v38 = vld [vmem:[#allocation7 + $0x54] ss:$8 sps:$4 sm:$0xff]   ;;  %v1470_v39 = vld [vmem:[#allocation5 + $0xd0] ss:$8 sps:$4 sm:$0xff]   ;;  %v1471_v40 = vld [vmem:[#allocation5 + $0xe4] ss:$8 sps:$4 sm:$0xff]  }
  0x57   :  { %389 = vmatpush1.bf16.msra.mxu0 %v1440_v7  ;;  %751 = vmatprep.subr.bf16.mxu1 %v1507_v26  ;;  %v1518_v41 = vld [vmem:[#allocation7 + $0x50] ss:$8 sps:$4 sm:$0xff]   ;;  %v1519_v42 = vld [vmem:[#allocation7 + $0x64] ss:$8 sps:$4 sm:$0xff]   ;;  %v1473_v43 = vld [vmem:[#allocation5 + $0xe0] ss:$8 sps:$4 sm:$0xff]  }
  0x58   :  { %390 = vmatprep.subr.bf16.mxu0 %v1441_v8  ;;  %v1521_v44 = vld [vmem:[#allocation7 + $0x60] ss:$8 sps:$4 sm:$0xff]   ;;  %v1474_v45 = vld [vmem:[#allocation5 + $0xf4] ss:$8 sps:$4 sm:$0xff]   ;;  %v1476_v47 = vld [vmem:[#allocation5 + $0xf0] ss:$8 sps:$4 sm:$0xff]  }
  0x59   :  { %v1522_v46 = vld [vmem:[#allocation7 + $0x74] ss:$8 sps:$4 sm:$0xff]   ;;  %v1524_v48 = vld [vmem:[#allocation7 + $0x70] ss:$8 sps:$4 sm:$0xff]   ;;  %v1525_v49 = vld [vmem:[#allocation7 + $0x84] ss:$8 sps:$4 sm:$0xff]  }
  0x5a   :  { %752 = vmatpush1.bf16.msra.mxu1 %v1509_v29  ;;  %v1477_v50 = vld [vmem:[#allocation2] ss:$8 sps:$4 sm:$0xff]   ;;  %v1480_v51 = vld [vmem:[#allocation2 + $0x14] ss:$8 sps:$4 sm:$0xff]   ;;  %v1530_v54 = vld [vmem:[#allocation7 + $0x90] ss:$8 sps:$4 sm:$0xff]  }
  0x5b   :  { %391 = vmatpush1.bf16.msra.mxu0 %v1443_v9  ;;  %753 = vmatprep.subr.bf16.mxu1 %v1510_v30  ;;  %v1527_v52 = vld [vmem:[#allocation7 + $0x80] ss:$8 sps:$4 sm:$0xff]   ;;  %v1528_v53 = vld [vmem:[#allocation7 + $0x94] ss:$8 sps:$4 sm:$0xff]   ;;  %v1531_v55 = vld [vmem:[#allocation7 + $0xa4] ss:$8 sps:$4 sm:$0xff]  }
  0x5c   :  { %392 = vmatprep.subr.bf16.mxu0 %v1444_v10  ;;  %v1482_v56 = vld [vmem:[#allocation2 + $0x10] ss:$8 sps:$4 sm:$0xff]   ;;  %v1483_v57 = vld [vmem:[#allocation2 + $0x24] ss:$8 sps:$4 sm:$0xff]   ;;  %v1533_v58 = vld [vmem:[#allocation7 + $0xa0] ss:$8 sps:$4 sm:$0xff]  }
  0x5d   :  { %v1534_v59 = vld [vmem:[#allocation7 + $0xb4] ss:$8 sps:$4 sm:$0xff]   ;;  %v1536_v60 = vld [vmem:[#allocation7 + $0xb0] ss:$8 sps:$4 sm:$0xff]   ;;  %v1537_v61 = vld [vmem:[#allocation7 + $0xc4] ss:$8 sps:$4 sm:$0xff]  }
  0x5e   :  { %754 = vmatpush1.bf16.msra.mxu1 %v1512_v33  ;;  %v1485_v62 = vld [vmem:[#allocation2 + $0x20] ss:$8 sps:$4 sm:$0xff]   ;;  %v1486_v63 = vld [vmem:[#allocation2 + $0x34] ss:$8 sps:$4 sm:$0xff]   ;;  %v1488_v2 = vld [vmem:[#allocation2 + $0x30] ss:$8 sps:$4 sm:$0xff]  }
  0x5f   :  { %393 = vmatpush1.bf16.msra.mxu0 %v1446_v11  ;;  %755 = vmatprep.subr.bf16.mxu1 %v1513_v34  ;;  %v1539_v0 = vld [vmem:[#allocation7 + $0xc0] ss:$8 sps:$4 sm:$0xff]   ;;  %v1540_v1 = vld [vmem:[#allocation7 + $0xd4] ss:$8 sps:$4 sm:$0xff]   ;;  %v1489_v3 = vld [vmem:[#allocation2 + $0x44] ss:$8 sps:$4 sm:$0xff]  }
  0x60   :  { %394 = vmatprep.subr.bf16.mxu0 %v1447_v12  ;;  %v1491_v4 = vld [vmem:[#allocation2 + $0x40] ss:$8 sps:$4 sm:$0xff]   ;;  %v1492_v5 = vld [vmem:[#allocation2 + $0x54] ss:$8 sps:$4 sm:$0xff]   ;;  %v1494_v6 = vld [vmem:[#allocation2 + $0x50] ss:$8 sps:$4 sm:$0xff]  }
  0x61   :  { %v1495_v7 = vld [vmem:[#allocation2 + $0x64] ss:$8 sps:$4 sm:$0xff]   ;;  %v1497_v8 = vld [vmem:[#allocation2 + $0x60] ss:$8 sps:$4 sm:$0xff]   ;;  %v1498_v9 = vld [vmem:[#allocation2 + $0x74] ss:$8 sps:$4 sm:$0xff]  }
  0x62   :  { %756 = vmatpush1.bf16.msra.mxu1 %v1515_v37  ;;  %v1500_v10 = vld [vmem:[#allocation2 + $0x70] ss:$8 sps:$4 sm:$0xff]   ;;  %v1543_v12 = vld [vmem:[#allocation7 + $0xe4] ss:$8 sps:$4 sm:$0xff]   ;;  %v1545_v13 = vld [vmem:[#allocation7 + $0xe0] ss:$8 sps:$4 sm:$0xff]  }
  0x63   :  { %395 = vmatpush1.bf16.msra.mxu0 %v1449_v14  ;;  %757 = vmatprep.subr.bf16.mxu1 %v1516_v38  ;;  %v1542_v11 = vld [vmem:[#allocation7 + $0xd0] ss:$8 sps:$4 sm:$0xff]   ;;  %v1546_v14 = vld [vmem:[#allocation7 + $0xf4] ss:$8 sps:$4 sm:$0xff]   ;;  %v1846_v20 = vld [vmem:[#allocation8 + $0x24] ss:$8 sps:$4 sm:$0xff]  }
  0x64   :  { %396 = vmatprep.subr.bf16.mxu0 %v1450_v15  ;;  %v1548_v15 = vld [vmem:[#allocation7 + $0xf0] ss:$8 sps:$4 sm:$0xff]   ;;  %v1849_v21 = vld [vmem:[#allocation8 + $0x20] ss:$8 sps:$4 sm:$0xff]   ;;  %v1864_v26 = vld [vmem:[#allocation8 + $0x54] ss:$8 sps:$4 sm:$0xff]  }
  0x65   :  { %v1855_v23 = vld [vmem:[#allocation8 + $0x30] ss:$8 sps:$4 sm:$0xff]   ;;  %v1861_v25 = vld [vmem:[#allocation8 + $0x40] ss:$8 sps:$4 sm:$0xff]   ;;  %v1876_v30 = vld [vmem:[#allocation8 + $0x74] ss:$8 sps:$4 sm:$0xff]  }
  0x66   :  { %758 = vmatpush1.bf16.msra.mxu1 %v1518_v41  ;;  %v1873_v29 = vld [vmem:[#allocation8 + $0x60] ss:$8 sps:$4 sm:$0xff]   ;;  %v1888_v34 = vld [vmem:[#allocation8 + $0x94] ss:$8 sps:$4 sm:$0xff]   ;;  %v132_v41 = vlaneseq }
  0x67   :  { %397 = vmatpush1.bf16.msra.mxu0 %v1452_v16  ;;  %759 = vmatprep.subr.bf16.mxu1 %v1519_v42  ;;  %v1838_v16 = vld [vmem:[#allocation8] ss:$8 sps:$4 sm:$0xff]   ;;  %v1900_v38 = vld [vmem:[#allocation8 + $0xb4] ss:$8 sps:$4 sm:$0xff]  }
  0x68   :  { %398 = vmatprep.subr.bf16.mxu0 %v1453_v17  ;;  %v1551_v17 = vld [vmem:[#allocation8 + $0x4] ss:$8 sps:$4 sm:$0xff]   ;;  %v1885_v33 = vld [vmem:[#allocation8 + $0x80] ss:$8 sps:$4 sm:$0xff]  }
  0x69   :  { %v1897_v37 = vld [vmem:[#allocation8 + $0xa0] ss:$8 sps:$4 sm:$0xff]  }
  0x6a   :  { %760 = vmatpush1.bf16.msra.mxu1 %v1521_v44  ;;  %v1909_v42 = vld [vmem:[#allocation8 + $0xc0] ss:$8 sps:$4 sm:$0xff]   ;;  %v133_v44 = vshrl.u32 %v132_v41, 7 }
  0x6b   :  { %399 = vmatpush1.bf16.msra.mxu0 %v1455_v18  ;;  %761 = vmatprep.subr.bf16.mxu1 %v1522_v46  ;;  %v1840_v18 = vld [vmem:[#allocation8 + $0x14] ss:$8 sps:$4 sm:$0xff]  }
  0x6c   :  { %400 = vmatprep.subr.bf16.mxu0 %v1456_v19  ;;  %v1843_v19 = vld [vmem:[#allocation8 + $0x10] ss:$8 sps:$4 sm:$0xff]   ;;  %v1918_v46 = vsub.s32 0, %v133_v44 }
  0x6e   :  { %762 = vmatpush1.bf16.msra.mxu1 %v1524_v48  ;;  %v1923_v48 = vsub.s32 1, %v133_v44 }
  0x6f   :  { %401 = vmatpush1.bf16.msra.mxu0 %v1458_v22  ;;  %763 = vmatprep.subr.bf16.mxu1 %v1525_v49  ;;  %v1852_v22 = vld [vmem:[#allocation8 + $0x34] ss:$8 sps:$4 sm:$0xff]  }
  0x70   :  { %402 = vmatprep.subr.bf16.mxu0 %v1459_v24  ;;  %v1858_v24 = vld [vmem:[#allocation8 + $0x44] ss:$8 sps:$4 sm:$0xff]  }
  0x72   :  { %764 = vmatpush1.bf16.msra.mxu1 %v1527_v52 }
  0x73   :  { %403 = vmatpush1.bf16.msra.mxu0 %v1461_v27  ;;  %765 = vmatprep.subr.bf16.mxu1 %v1528_v53  ;;  %v1867_v27 = vld [vmem:[#allocation8 + $0x50] ss:$8 sps:$4 sm:$0xff]  }
  0x74   :  { %404 = vmatprep.subr.bf16.mxu0 %v1462_v28  ;;  %v1870_v28 = vld [vmem:[#allocation8 + $0x64] ss:$8 sps:$4 sm:$0xff]  }
  0x76   :  { %766 = vmatpush1.bf16.msra.mxu1 %v1530_v54 }
  0x77   :  { %405 = vmatpush1.bf16.msra.mxu0 %v1464_v31  ;;  %767 = vmatprep.subr.bf16.mxu1 %v1531_v55  ;;  %v1879_v31 = vld [vmem:[#allocation8 + $0x70] ss:$8 sps:$4 sm:$0xff]  }
  0x78   :  { %406 = vmatprep.subr.bf16.mxu0 %v1465_v32  ;;  %v1882_v32 = vld [vmem:[#allocation8 + $0x84] ss:$8 sps:$4 sm:$0xff]  }
  0x7a   :  { %768 = vmatpush1.bf16.msra.mxu1 %v1533_v58 }
  0x7b   :  { %407 = vmatpush1.bf16.msra.mxu0 %v1467_v35  ;;  %769 = vmatprep.subr.bf16.mxu1 %v1534_v59  ;;  %v1891_v35 = vld [vmem:[#allocation8 + $0x90] ss:$8 sps:$4 sm:$0xff]  }
  0x7c   :  { %408 = vmatprep.subr.bf16.mxu0 %v1468_v36  ;;  %v1894_v36 = vld [vmem:[#allocation8 + $0xa4] ss:$8 sps:$4 sm:$0xff]  }
  0x7e   :  { %770 = vmatpush1.bf16.msra.mxu1 %v1536_v60 }
  0x7f   :  { %409 = vmatpush1.bf16.msra.mxu0 %v1470_v39  ;;  %771 = vmatprep.subr.bf16.mxu1 %v1537_v61  ;;  %v1903_v39 = vld [vmem:[#allocation8 + $0xb0] ss:$8 sps:$4 sm:$0xff]  }
  0x80   :  { %410 = vmatprep.subr.bf16.mxu0 %v1471_v40  ;;  %v1906_v40 = vld [vmem:[#allocation8 + $0xc4] ss:$8 sps:$4 sm:$0xff]  }
  0x82   :  { %772 = vmatpush1.bf16.msra.mxu1 %v1539_v0 }
  0x83   :  { %411 = vmatpush1.bf16.msra.mxu0 %v1473_v43  ;;  %773 = vmatprep.subr.bf16.mxu1 %v1540_v1  ;;  %v1912_v43 = vld [vmem:[#allocation8 + $0xd4] ss:$8 sps:$4 sm:$0xff]  }
  0x84   :  { %412 = vmatprep.subr.bf16.mxu0 %v1474_v45  ;;  %v1915_v45 = vld [vmem:[#allocation8 + $0xd0] ss:$8 sps:$4 sm:$0xff]  }
  0x86   :  { %774 = vmatpush1.bf16.msra.mxu1 %v1542_v11 }
  0x87   :  { %413 = vmatpush1.bf16.msra.mxu0 %v1476_v47  ;;  %775 = vmatprep.subr.bf16.mxu1 %v1543_v12  ;;  %v130_v47 = vld [vmem:[%s2087_s2] sm:$0x3] }
  0x88   :  { %1112 = vmatprep.subr.bf16.mxu0 %v1551_v17  ;;  %v1927_v49 = vrot.slane %v130_v47, %v1918_v46 }
  0x8a   :  { %415 = vmatmul.mubr.bf16.vlgmr.msra.gmra.mrb[0].mxu0 %v1477_v50  ;;  %776 = vmatpush1.bf16.msra.mxu1 %v1545_v13  ;;  %v1930_v50 = vrot.slane %v130_v47, %v1923_v48 }
  0x8b   :  { %424 = vmatprep.mubr.bf16.mxu0 %v1480_v51  ;;  %777 = vmatprep.subr.bf16.mxu1 %v1546_v14 }
  0x8c   :  { %1113 = vmatpush1.bf16.msra.mxu0 %v1838_v16 }
  0x8d   :  { %1114 = vmatprep.subr.bf16.mxu0 %v1840_v18 }
  0x8e   :  { %778 = vmatpush1.bf16.msra.mxu1 %v1548_v15 }
  0x8f   :  { %1388 = vmatprep.subr.bf16.mxu1 %v1551_v17 }
  0x90   :  { %1115 = vmatpush1.bf16.msra.mxu0 %v1843_v19 }
  0x91   :  { %1116 = vmatprep.subr.bf16.mxu0 %v1846_v20 }
  0x92   :  { %425 = vmatmul.mubr.bf16.gmra.mrb[4].mxu0 %v1482_v56 }
  0x93   :  { %434 = vmatprep.mubr.bf16.mxu0 %v1483_v57 }
  0x94   :  { %1117 = vmatpush1.bf16.msra.mxu0 %v1849_v21 }
  0x95   :  { %1118 = vmatprep.subr.bf16.mxu0 %v1852_v22 }
  0x98   :  { %1119 = vmatpush1.bf16.msra.mxu0 %v1855_v23 }
  0x99   :  { %1120 = vmatprep.subr.bf16.mxu0 %v1858_v24 }
  0x9a   :  { %435 = vmatmul.mubr.bf16.gmra.mrb[8].mxu0 %v1485_v62 }
  0x9b   :  { %444 = vmatprep.mubr.bf16.mxu0 %v1486_v63 }
  0x9c   :  { %1121 = vmatpush1.bf16.msra.mxu0 %v1861_v25 }
  0x9d   :  { %1122 = vmatprep.subr.bf16.mxu0 %v1864_v26 }
  0xa0   :  { %1123 = vmatpush1.bf16.msra.mxu0 %v1867_v27 }
  0xa1   :  { %1124 = vmatprep.subr.bf16.mxu0 %v1870_v28 }
  0xa2   :  { %445 = vmatmul.mubr.bf16.gmra.mrb[12].mxu0 %v1488_v2 }
  0xa3   :  { %454 = vmatprep.mubr.bf16.mxu0 %v1489_v3 }
  0xa4   :  { %1125 = vmatpush1.bf16.msra.mxu0 %v1873_v29 }
  0xa5   :  { %1126 = vmatprep.subr.bf16.mxu0 %v1876_v30 }
  0xa8   :  { %1127 = vmatpush1.bf16.msra.mxu0 %v1879_v31 }
  0xa9   :  { %1128 = vmatprep.subr.bf16.mxu0 %v1882_v32 }
  0xaa   :  { %455 = vmatmul.mubr.bf16.gmra.mrb[16].mxu0 %v1491_v4 }
  0xab   :  { %464 = vmatprep.mubr.bf16.mxu0 %v1492_v5 }
  0xac   :  { %1129 = vmatpush1.bf16.msra.mxu0 %v1885_v33 }
  0xad   :  { %1130 = vmatprep.subr.bf16.mxu0 %v1888_v34 }
  0xb0   :  { %1131 = vmatpush1.bf16.msra.mxu0 %v1891_v35 }
  0xb1   :  { %1132 = vmatprep.subr.bf16.mxu0 %v1894_v36 }
  0xb2   :  { %465 = vmatmul.mubr.bf16.gmra.mrb[20].mxu0 %v1494_v6 }
  0xb3   :  { %474 = vmatprep.mubr.bf16.mxu0 %v1495_v7 }
  0xb4   :  { %1133 = vmatpush1.bf16.msra.mxu0 %v1897_v37 }
  0xb5   :  { %1134 = vmatprep.subr.bf16.mxu0 %v1900_v38 }
  0xb8   :  { %1135 = vmatpush1.bf16.msra.mxu0 %v1903_v39 }
  0xb9   :  { %1136 = vmatprep.subr.bf16.mxu0 %v1906_v40 }
  0xba   :  { %475 = vmatmul.mubr.bf16.gmra.mrb[24].mxu0 %v1497_v8 }
  0xbb   :  { %484 = vmatprep.mubr.bf16.mxu0 %v1498_v9 }
  0xbc   :  { %1137 = vmatpush1.bf16.msra.mxu0 %v1909_v42 }
  0xbd   :  { %1138 = vmatprep.subr.bf16.mxu0 %v1912_v43 }
  0xc0   :  { %1139 = vmatpush1.bf16.msra.mxu0 %v1915_v45 }
  0xc2   :  { %485 = vmatmul.mubr.bf16.gmra.mrb[28].mxu0 %v1500_v10 }
 0x15d   :  { %v416_v51 = vpop.f32.mrb[0].mxu0 }
 0x15e   :  { %v417_v52 = vadd.f32 %v416_v51, %v1927_v49  ;;  %v418_v53 = vpop.f32.mrb[1].mxu0 }
 0x15f   :  { %v419_v54 = vadd.f32 %v418_v53, %v1930_v50  ;;  %v420_v55 = vpop.f32.mrb[2].mxu0 }
 0x160   :  { %v421_v56 = vadd.f32 %v420_v55, %v1927_v49  ;;  %v422_v57 = vpop.f32.mrb[3].mxu0  ;;  %v495_v59 = vmax.f32 %v417_v52, 0.0 }
 0x161   :  { %v423_v58 = vadd.f32 %v422_v57, %v1930_v50  ;;  %v496_v61 = vmax.f32 %v419_v54, 0.0 }
 0x162   :  { %v497_v60 = vmax.f32 %v421_v56, 0.0 }
 0x163   :  { %v498_v62 = vmax.f32 %v423_v58, 0.0 }
 0x164   :  { %v527_v63 = vpack.c.bf16 %v497_v60, %v495_v59 }
 0x165   :  { %v426_v0 = vpop.f32.mrb[4].mxu0  ;;  %v528_v1 = vpack.c.bf16 %v498_v62, %v496_v61 }
 0x166   :  { %v427_v2 = vadd.f32 %v426_v0, %v1927_v49  ;;  %v428_v3 = vpop.f32.mrb[5].mxu0 }
 0x167   :  { %v429_v4 = vadd.f32 %v428_v3, %v1930_v50  ;;  %v430_v5 = vpop.f32.mrb[6].mxu0  ;;  %779 = vmatprep.mubr.bf16.mxu1 %v528_v1 }
 0x168   :  { %v431_v6 = vadd.f32 %v430_v5, %v1927_v49  ;;  %v432_v7 = vpop.f32.mrb[7].mxu0  ;;  %780 = vmatmul.mubr.bf16.vlgmr.msra.gmra.mrb[0].mxu1 %v527_v63  ;;  %v499_v9 = vmax.f32 %v427_v2, 0.0 }
 0x169   :  { %v433_v8 = vadd.f32 %v432_v7, %v1930_v50  ;;  %1404 = vmatpush1.bf16.msra.mxu1 %v1838_v16  ;;  %v500_v11 = vmax.f32 %v429_v4, 0.0 }
 0x16a   :  { %v501_v10 = vmax.f32 %v431_v6, 0.0  ;;  %1389 = vmatprep.subr.bf16.mxu1 %v1840_v18 }
 0x16b   :  { %v502_v12 = vmax.f32 %v433_v8, 0.0 }
 0x16c   :  { %v529_v13 = vpack.c.bf16 %v501_v10, %v499_v9 }
 0x16d   :  { %v530_v14 = vpack.c.bf16 %v502_v12, %v500_v11  ;;  %v436_v15 = vpop.f32.mrb[8].mxu0  ;;  %1405 = vmatpush1.bf16.msra.mxu1 %v1843_v19 }
 0x16e   :  { %v437_v17 = vadd.f32 %v436_v15, %v1927_v49  ;;  %v438_v41 = vpop.f32.mrb[9].mxu0  ;;  %1390 = vmatprep.subr.bf16.mxu1 %v1846_v20 }
 0x16f   :  { %v439_v44 = vadd.f32 %v438_v41, %v1930_v50  ;;  %v440_v47 = vpop.f32.mrb[10].mxu0  ;;  %789 = vmatprep.mubr.bf16.mxu1 %v530_v14 }
 0x170   :  { %v441_v16 = vadd.f32 %v440_v47, %v1927_v49  ;;  %v442_v51 = vpop.f32.mrb[11].mxu0  ;;  %790 = vmatmul.mubr.bf16.gmra.mrb[4].mxu1 %v529_v13  ;;  %v503_v52 = vmax.f32 %v437_v17, 0.0 }
 0x171   :  { %v443_v18 = vadd.f32 %v442_v51, %v1930_v50  ;;  %1406 = vmatpush1.bf16.msra.mxu1 %v1849_v21  ;;  %v504_v19 = vmax.f32 %v439_v44, 0.0 }
 0x172   :  { %v505_v53 = vmax.f32 %v441_v16, 0.0  ;;  %1391 = vmatprep.subr.bf16.mxu1 %v1852_v22 }
 0x173   :  { %v506_v54 = vmax.f32 %v443_v18, 0.0 }
 0x174   :  { %v531_v55 = vpack.c.bf16 %v505_v53, %v503_v52 }
 0x175   :  { %v532_v20 = vpack.c.bf16 %v506_v54, %v504_v19  ;;  %v446_v56 = vpop.f32.mrb[12].mxu0  ;;  %1407 = vmatpush1.bf16.msra.mxu1 %v1855_v23 }
 0x176   :  { %v447_v57 = vadd.f32 %v446_v56, %v1927_v49  ;;  %v448_v58 = vpop.f32.mrb[13].mxu0  ;;  %1392 = vmatprep.subr.bf16.mxu1 %v1858_v24 }
 0x177   :  { %v449_v59 = vadd.f32 %v448_v58, %v1930_v50  ;;  %v450_v60 = vpop.f32.mrb[14].mxu0  ;;  %799 = vmatprep.mubr.bf16.mxu1 %v532_v20 }
 0x178   :  { %v451_v21 = vadd.f32 %v450_v60, %v1927_v49  ;;  %v452_v61 = vpop.f32.mrb[15].mxu0  ;;  %800 = vmatmul.mubr.bf16.gmra.mrb[8].mxu1 %v531_v55  ;;  %v507_v62 = vmax.f32 %v447_v57, 0.0 }
 0x179   :  { %v453_v22 = vadd.f32 %v452_v61, %v1930_v50  ;;  %1408 = vmatpush1.bf16.msra.mxu1 %v1861_v25  ;;  %v508_v23 = vmax.f32 %v449_v59, 0.0 }
 0x17a   :  { %v509_v63 = vmax.f32 %v451_v21, 0.0  ;;  %1393 = vmatprep.subr.bf16.mxu1 %v1864_v26 }
 0x17b   :  { %v510_v0 = vmax.f32 %v453_v22, 0.0 }
 0x17c   :  { %v533_v1 = vpack.c.bf16 %v509_v63, %v507_v62 }
 0x17d   :  { %v534_v24 = vpack.c.bf16 %v510_v0, %v508_v23  ;;  %v456_v2 = vpop.f32.mrb[16].mxu0  ;;  %1409 = vmatpush1.bf16.msra.mxu1 %v1867_v27 }
 0x17e   :  { %v457_v3 = vadd.f32 %v456_v2, %v1927_v49  ;;  %v458_v4 = vpop.f32.mrb[17].mxu0  ;;  %1394 = vmatprep.subr.bf16.mxu1 %v1870_v28 }
 0x17f   :  { %v459_v5 = vadd.f32 %v458_v4, %v1930_v50  ;;  %v460_v6 = vpop.f32.mrb[18].mxu0  ;;  %809 = vmatprep.mubr.bf16.mxu1 %v534_v24  ;;  %v1593_v24 = vld [vmem:[#allocation8 + $0xe4] ss:$8 sps:$4 sm:$0xff]  }
 0x180   :  { %v461_v25 = vadd.f32 %v460_v6, %v1927_v49  ;;  %v462_v7 = vpop.f32.mrb[19].mxu0  ;;  %810 = vmatmul.mubr.bf16.gmra.mrb[12].mxu1 %v533_v1  ;;  %v511_v8 = vmax.f32 %v457_v3, 0.0  ;;  %1140 = vmatprep.subr.bf16.mxu0 %v1593_v24 }
 0x181   :  { %v463_v26 = vadd.f32 %v462_v7, %v1930_v50  ;;  %1410 = vmatpush1.bf16.msra.mxu1 %v1873_v29  ;;  %v512_v27 = vmax.f32 %v459_v5, 0.0 }
 0x182   :  { %v513_v9 = vmax.f32 %v461_v25, 0.0  ;;  %1395 = vmatprep.subr.bf16.mxu1 %v1876_v30 }
 0x183   :  { %v514_v10 = vmax.f32 %v463_v26, 0.0 }
 0x184   :  { %v535_v11 = vpack.c.bf16 %v513_v9, %v511_v8 }
 0x185   :  { %v536_v28 = vpack.c.bf16 %v514_v10, %v512_v27  ;;  %v466_v12 = vpop.f32.mrb[20].mxu0  ;;  %1411 = vmatpush1.bf16.msra.mxu1 %v1879_v31 }
 0x186   :  { %v467_v13 = vadd.f32 %v466_v12, %v1927_v49  ;;  %v468_v14 = vpop.f32.mrb[21].mxu0  ;;  %1396 = vmatprep.subr.bf16.mxu1 %v1882_v32 }
 0x187   :  { %v469_v15 = vadd.f32 %v468_v14, %v1930_v50  ;;  %v470_v17 = vpop.f32.mrb[22].mxu0  ;;  %819 = vmatprep.mubr.bf16.mxu1 %v536_v28 }
 0x188   :  { %v471_v29 = vadd.f32 %v470_v17, %v1927_v49  ;;  %v472_v41 = vpop.f32.mrb[23].mxu0  ;;  %820 = vmatmul.mubr.bf16.gmra.mrb[16].mxu1 %v535_v11  ;;  %v515_v44 = vmax.f32 %v467_v13, 0.0 }
 0x189   :  { %v473_v30 = vadd.f32 %v472_v41, %v1930_v50  ;;  %1412 = vmatpush1.bf16.msra.mxu1 %v1885_v33  ;;  %v516_v31 = vmax.f32 %v469_v15, 0.0 }
 0x18a   :  { %v517_v47 = vmax.f32 %v471_v29, 0.0  ;;  %1397 = vmatprep.subr.bf16.mxu1 %v1888_v34 }
 0x18b   :  { %v518_v16 = vmax.f32 %v473_v30, 0.0 }
 0x18c   :  { %v537_v51 = vpack.c.bf16 %v517_v47, %v515_v44 }
 0x18d   :  { %v538_v32 = vpack.c.bf16 %v518_v16, %v516_v31  ;;  %v476_v18 = vpop.f32.mrb[24].mxu0  ;;  %1413 = vmatpush1.bf16.msra.mxu1 %v1891_v35 }
 0x18e   :  { %v477_v52 = vadd.f32 %v476_v18, %v1927_v49  ;;  %v478_v53 = vpop.f32.mrb[25].mxu0  ;;  %1398 = vmatprep.subr.bf16.mxu1 %v1894_v36 }
 0x18f   :  { %v479_v19 = vadd.f32 %v478_v53, %v1930_v50  ;;  %v480_v54 = vpop.f32.mrb[26].mxu0  ;;  %829 = vmatprep.mubr.bf16.mxu1 %v538_v32 }
 0x190   :  { %v481_v33 = vadd.f32 %v480_v54, %v1927_v49  ;;  %v482_v55 = vpop.f32.mrb[27].mxu0  ;;  %830 = vmatmul.mubr.bf16.gmra.mrb[20].mxu1 %v537_v51  ;;  %v519_v20 = vmax.f32 %v477_v52, 0.0 }
 0x191   :  { %v483_v34 = vadd.f32 %v482_v55, %v1930_v50  ;;  %1414 = vmatpush1.bf16.msra.mxu1 %v1897_v37  ;;  %v520_v35 = vmax.f32 %v479_v19, 0.0 }
 0x192   :  { %v521_v56 = vmax.f32 %v481_v33, 0.0  ;;  %1399 = vmatprep.subr.bf16.mxu1 %v1900_v38 }
 0x193   :  { %v522_v57 = vmax.f32 %v483_v34, 0.0 }
 0x194   :  { %v539_v58 = vpack.c.bf16 %v521_v56, %v519_v20 }
 0x195   :  { %v540_v36 = vpack.c.bf16 %v522_v57, %v520_v35  ;;  %v486_v59 = vpop.f32.mrb[28].mxu0  ;;  %1415 = vmatpush1.bf16.msra.mxu1 %v1903_v39 }
 0x196   :  { %v487_v60 = vadd.f32 %v486_v59, %v1927_v49  ;;  %v488_v21 = vpop.f32.mrb[29].mxu0  ;;  %1400 = vmatprep.subr.bf16.mxu1 %v1906_v40 }
 0x197   :  { %v489_v61 = vadd.f32 %v488_v21, %v1930_v50  ;;  %v490_v22 = vpop.f32.mrb[30].mxu0  ;;  %839 = vmatprep.mubr.bf16.mxu1 %v540_v36 }
 0x198   :  { %v491_v37 = vadd.f32 %v490_v22, %v1927_v49  ;;  %v492_v62 = vpop.f32.mrb[31].mxu0  ;;  %840 = vmatmul.mubr.bf16.gmra.mrb[24].mxu1 %v539_v58  ;;  %v523_v63 = vmax.f32 %v487_v60, 0.0  ;;  %v1591_v49 = vld [vmem:[#allocation8 + $0xe0] ss:$8 sps:$4 sm:$0xff]  }
 0x199   :  { %v493_v38 = vadd.f32 %v492_v62, %v1930_v50  ;;  %1416 = vmatpush1.bf16.msra.mxu1 %v1909_v42  ;;  %v524_v39 = vmax.f32 %v489_v61, 0.0  ;;  %1141 = vmatpush1.bf16.msra.mxu0 %v1591_v49  ;;  %v1596_v50 = vld [vmem:[#allocation8 + $0xf4] ss:$8 sps:$4 sm:$0xff]   ;;  %v1594_v42 = vld [vmem:[#allocation8 + $0xf0] ss:$8 sps:$4 sm:$0xff]  }
 0x19a   :  { %v525_v23 = vmax.f32 %v491_v37, 0.0  ;;  %1401 = vmatprep.subr.bf16.mxu1 %v1912_v43  ;;  %1142 = vmatprep.subr.bf16.mxu0 %v1596_v50  ;;  %v575_v43 = vld [vmem:[%s2089_s4] sm:$0x3] }
 0x19b   :  { %v526_v0 = vmax.f32 %v493_v38, 0.0  ;;  %v1998_v2 = vrot.slane %v575_v43, %v1923_v48 }
 0x19c   :  { %v541_v1 = vpack.c.bf16 %v525_v23, %v523_v63 }
 0x19d   :  { %v542_v40 = vpack.c.bf16 %v526_v0, %v524_v39  ;;  %1417 = vmatpush1.bf16.msra.mxu1 %v1915_v45  ;;  %1143 = vmatpush1.bf16.msra.mxu0 %v1594_v42  ;;  %v1995_v45 = vrot.slane %v575_v43, %v1918_v46 }
 0x19e   :  { %1402 = vmatprep.subr.bf16.mxu1 %v1593_v24 }
 0x19f   :  { %849 = vmatprep.mubr.bf16.mxu1 %v542_v40 }
 0x1a0   :  { %850 = vmatmul.mubr.bf16.gmra.mrb[28].mxu1 %v541_v1 }
 0x1a1   :  { %1418 = vmatpush1.bf16.msra.mxu1 %v1591_v49 }
 0x1a2   :  { %1403 = vmatprep.subr.bf16.mxu1 %v1596_v50 }
 0x1a5   :  { %1419 = vmatpush1.bf16.msra.mxu1 %v1594_v42 }
 0x23b   :  { %v781_v3 = vpop.f32.mrb[0].mxu1 }
 0x23c   :  { %v782_v4 = vadd.f32 %v781_v3, %v1995_v45  ;;  %v783_v5 = vpop.f32.mrb[1].mxu1 }
 0x23d   :  { %v784_v6 = vadd.f32 %v783_v5, %v1998_v2  ;;  %v785_v25 = vpop.f32.mrb[2].mxu1 }
 0x23e   :  { %v786_v7 = vadd.f32 %v785_v25, %v1995_v45  ;;  %v787_v26 = vpop.f32.mrb[3].mxu1  ;;  %v860_v9 = vmax.f32 %v782_v4, 0.0 }
 0x23f   :  { %v788_v8 = vadd.f32 %v787_v26, %v1998_v2  ;;  %v861_v10 = vmax.f32 %v784_v6, 0.0 }
 0x240   :  { %v862_v27 = vmax.f32 %v786_v7, 0.0 }
 0x241   :  { %v863_v11 = vmax.f32 %v788_v8, 0.0 }
 0x242   :  { %v892_v28 = vpack.c.bf16 %v862_v27, %v860_v9 }
 0x243   :  { %v893_v12 = vpack.c.bf16 %v863_v11, %v861_v10  ;;  %v791_v13 = vpop.f32.mrb[4].mxu1 }
 0x244   :  { %v792_v14 = vadd.f32 %v791_v13, %v1995_v45  ;;  %v793_v15 = vpop.f32.mrb[5].mxu1 }
 0x245   :  { %v794_v17 = vadd.f32 %v793_v15, %v1998_v2  ;;  %v795_v29 = vpop.f32.mrb[6].mxu1  ;;  %1144 = vmatprep.mubr.bf16.mxu0 %v893_v12 }
 0x246   :  { %v796_v41 = vadd.f32 %v795_v29, %v1995_v45  ;;  %v797_v30 = vpop.f32.mrb[7].mxu1  ;;  %1145 = vmatmul.mubr.bf16.vlgmr.msra.gmra.mrb[32].mxu0 %v892_v28  ;;  %v864_v47 = vmax.f32 %v792_v14, 0.0 }
 0x247   :  { %v798_v44 = vadd.f32 %v797_v30, %v1998_v2  ;;  %v865_v16 = vmax.f32 %v794_v17, 0.0 }
 0x248   :  { %v866_v31 = vmax.f32 %v796_v41, 0.0 }
 0x249   :  { %v867_v51 = vmax.f32 %v798_v44, 0.0 }
 0x24a   :  { %v894_v32 = vpack.c.bf16 %v866_v31, %v864_v47 }
 0x24b   :  { %v895_v18 = vpack.c.bf16 %v867_v51, %v865_v16  ;;  %v801_v52 = vpop.f32.mrb[8].mxu1 }
 0x24c   :  { %v802_v53 = vadd.f32 %v801_v52, %v1995_v45  ;;  %v803_v19 = vpop.f32.mrb[9].mxu1 }
 0x24d   :  { %v804_v54 = vadd.f32 %v803_v19, %v1998_v2  ;;  %v805_v33 = vpop.f32.mrb[10].mxu1  ;;  %1154 = vmatprep.mubr.bf16.mxu0 %v895_v18 }
 0x24e   :  { %v806_v55 = vadd.f32 %v805_v33, %v1995_v45  ;;  %v807_v34 = vpop.f32.mrb[11].mxu1  ;;  %1155 = vmatmul.mubr.bf16.gmra.mrb[36].mxu0 %v894_v32  ;;  %v868_v56 = vmax.f32 %v802_v53, 0.0 }
 0x24f   :  { %v808_v20 = vadd.f32 %v807_v34, %v1998_v2  ;;  %v869_v57 = vmax.f32 %v804_v54, 0.0 }
 0x250   :  { %v870_v35 = vmax.f32 %v806_v55, 0.0 }
 0x251   :  { %v871_v58 = vmax.f32 %v808_v20, 0.0 }
 0x252   :  { %v896_v36 = vpack.c.bf16 %v870_v35, %v868_v56 }
 0x253   :  { %v897_v59 = vpack.c.bf16 %v871_v58, %v869_v57  ;;  %v811_v60 = vpop.f32.mrb[12].mxu1 }
 0x254   :  { %v812_v21 = vadd.f32 %v811_v60, %v1995_v45  ;;  %v813_v61 = vpop.f32.mrb[13].mxu1 }
 0x255   :  { %v814_v22 = vadd.f32 %v813_v61, %v1998_v2  ;;  %v815_v37 = vpop.f32.mrb[14].mxu1  ;;  %1164 = vmatprep.mubr.bf16.mxu0 %v897_v59 }
 0x256   :  { %v816_v62 = vadd.f32 %v815_v37, %v1995_v45  ;;  %v817_v38 = vpop.f32.mrb[15].mxu1  ;;  %1165 = vmatmul.mubr.bf16.gmra.mrb[40].mxu0 %v896_v36  ;;  %v872_v23 = vmax.f32 %v812_v21, 0.0 }
 0x257   :  { %v818_v63 = vadd.f32 %v817_v38, %v1998_v2  ;;  %v873_v0 = vmax.f32 %v814_v22, 0.0 }
 0x258   :  { %v874_v39 = vmax.f32 %v816_v62, 0.0 }
 0x259   :  { %v875_v1 = vmax.f32 %v818_v63, 0.0 }
 0x25a   :  { %v898_v40 = vpack.c.bf16 %v874_v39, %v872_v23 }
 0x25b   :  { %v899_v24 = vpack.c.bf16 %v875_v1, %v873_v0  ;;  %v821_v49 = vpop.f32.mrb[16].mxu1  ;;  %v940_v0 = vld [vmem:[%s2091_s6] sm:$0x3]  ;;  %s1721_s6 = smov [#allocation10]  }
 0x25c   :  { %v822_v50 = vadd.f32 %v821_v49, %v1995_v45  ;;  %v823_v42 = vpop.f32.mrb[17].mxu1  ;;  %v2036_v1 = vrot.slane %v940_v0, %v1918_v46  ;;  %s1262_s28 = sshll.u32 %s1721_s6, 4  ;;  %s1263_s28 = int_to_ptr.vmem [resolvable:$true] %s1262_s28 }
 0x25d   :  { %v824_v43 = vadd.f32 %v823_v42, %v1998_v2  ;;  %v825_v3 = vpop.f32.mrb[18].mxu1  ;;  %1174 = vmatprep.mubr.bf16.mxu0 %v899_v24  ;;  %s1685_s29 = scalar_lea.vmem %s1263_s28, 4096  ;;  %p1690_p5 = scmp.lt.s32.totalorder %s1263_s28, %s1263_s28 }
 0x25e   :  { %v826_v4 = vadd.f32 %v825_v3, %v1995_v45  ;;  %v827_v5 = vpop.f32.mrb[19].mxu1  ;;  %1175 = vmatmul.mubr.bf16.gmra.mrb[44].mxu0 %v898_v40  ;;  %v876_v25 = vmax.f32 %v822_v50, 0.0  ;;  %p1686_p4 = scmp.ne.s32.totalorder %s1263_s28, %s1685_s29  ;;  %p1691_p6 = scmp.lt.s32.totalorder %s1685_s29, %s1685_s29 }
 0x25f   :  { %v828_v6 = vadd.f32 %v827_v5, %v1998_v2  ;;  %v877_v26 = vmax.f32 %v824_v43, 0.0 }
 0x260   :  { %v878_v7 = vmax.f32 %v826_v4, 0.0  ;;  %p1692_p7 = por %p1691_p6, %p1690_p5 }
 0x261   :  { %v879_v8 = vmax.f32 %v828_v6, 0.0 }
 0x262   :  { %v900_v9 = vpack.c.bf16 %v878_v7, %v876_v25  ;;  %p1693_p8 = pnand %p1692_p7, %p1686_p4 }
 0x263   :  { %v901_v27 = vpack.c.bf16 %v879_v8, %v877_v26  ;;  %v831_v10 = vpop.f32.mrb[20].mxu1 }
 0x264   :  { %v832_v11 = vadd.f32 %v831_v10, %v1995_v45  ;;  %v833_v28 = vpop.f32.mrb[21].mxu1 }
 0x265   :  { %v834_v12 = vadd.f32 %v833_v28, %v1998_v2  ;;  %v835_v13 = vpop.f32.mrb[22].mxu1  ;;  %1184 = vmatprep.mubr.bf16.mxu1 %v901_v27 }
 0x266   :  { %v836_v14 = vadd.f32 %v835_v13, %v1995_v45  ;;  %v837_v15 = vpop.f32.mrb[23].mxu1  ;;  %1185 = vmatmul.mubr.bf16.vlgmr.msra.gmra.mrb[32].mxu1 %v900_v9  ;;  %v880_v29 = vmax.f32 %v832_v11, 0.0 }
 0x267   :  { %v838_v17 = vadd.f32 %v837_v15, %v1998_v2  ;;  %v881_v30 = vmax.f32 %v834_v12, 0.0 }
 0x268   :  { %v882_v41 = vmax.f32 %v836_v14, 0.0 }
 0x269   :  { %v883_v44 = vmax.f32 %v838_v17, 0.0 }
 0x26a   :  { %v902_v47 = vpack.c.bf16 %v882_v41, %v880_v29 }
 0x26b   :  { %v903_v31 = vpack.c.bf16 %v883_v44, %v881_v30  ;;  %v841_v16 = vpop.f32.mrb[24].mxu1 }
 0x26c   :  { %v842_v51 = vadd.f32 %v841_v16, %v1995_v45  ;;  %v843_v32 = vpop.f32.mrb[25].mxu1 }
 0x26d   :  { %v844_v18 = vadd.f32 %v843_v32, %v1998_v2  ;;  %v845_v52 = vpop.f32.mrb[26].mxu1  ;;  %1194 = vmatprep.mubr.bf16.mxu1 %v903_v31 }
 0x26e   :  { %v846_v53 = vadd.f32 %v845_v52, %v1995_v45  ;;  %v847_v19 = vpop.f32.mrb[27].mxu1  ;;  %1195 = vmatmul.mubr.bf16.gmra.mrb[36].mxu1 %v902_v47  ;;  %v884_v33 = vmax.f32 %v842_v51, 0.0 }
 0x26f   :  { %v848_v54 = vadd.f32 %v847_v19, %v1998_v2  ;;  %v885_v34 = vmax.f32 %v844_v18, 0.0 }
 0x270   :  { %v886_v55 = vmax.f32 %v846_v53, 0.0 }
 0x271   :  { %v887_v20 = vmax.f32 %v848_v54, 0.0 }
 0x272   :  { %v904_v56 = vpack.c.bf16 %v886_v55, %v884_v33 }
 0x273   :  { %v905_v35 = vpack.c.bf16 %v887_v20, %v885_v34  ;;  %v851_v57 = vpop.f32.mrb[28].mxu1 }
 0x274   :  { %v852_v58 = vadd.f32 %v851_v57, %v1995_v45  ;;  %v853_v36 = vpop.f32.mrb[29].mxu1 }
 0x275   :  { %v854_v59 = vadd.f32 %v853_v36, %v1998_v2  ;;  %v855_v60 = vpop.f32.mrb[30].mxu1  ;;  %1204 = vmatprep.mubr.bf16.mxu1 %v905_v35 }
 0x276   :  { %v856_v21 = vadd.f32 %v855_v60, %v1995_v45  ;;  %v857_v61 = vpop.f32.mrb[31].mxu1  ;;  %1205 = vmatmul.mubr.bf16.gmra.mrb[40].mxu1 %v904_v56  ;;  %v888_v37 = vmax.f32 %v852_v58, 0.0  ;;  %v2039_v45 = vrot.slane %v940_v0, %v1923_v48 }
 0x277   :  { %v858_v22 = vadd.f32 %v857_v61, %v1998_v2  ;;  %v889_v38 = vmax.f32 %v854_v59, 0.0 }
 0x278   :  { %v890_v62 = vmax.f32 %v856_v21, 0.0 }
 0x279   :  { %v891_v63 = vmax.f32 %v858_v22, 0.0 }
 0x27a   :  { %v906_v23 = vpack.c.bf16 %v890_v62, %v888_v37 }
 0x27b   :  { %v907_v39 = vpack.c.bf16 %v891_v63, %v889_v38 }
 0x27d   :  { %1214 = vmatprep.mubr.bf16.mxu1 %v907_v39 }
 0x27e   :  { %1215 = vmatmul.mubr.bf16.gmra.mrb[44].mxu1 %v906_v23 }
 0x319   :  { %v1146_v40 = vpop.f32.mrb[32].mxu0 }
 0x31a   :  { %v1147_v2 = vadd.f32 %v1146_v40, %v2036_v1  ;;  %v1148_v24 = vpop.f32.mrb[33].mxu0 }
 0x31b   :  { %v1149_v49 = vadd.f32 %v1148_v24, %v2039_v45  ;;  %v1150_v50 = vpop.f32.mrb[34].mxu0 }
 0x31c   :  { %1225 = vst [vmem:[#allocation10] sm:$0xff] %v1147_v2  ;;  %v1151_v42 = vadd.f32 %v1150_v50, %v2036_v1  ;;  %v1152_v43 = vpop.f32.mrb[35].mxu0 }
 0x31d   :  { %1226 = vst [vmem:[#allocation10 + $0x8] sm:$0xff] %v1149_v49  ;;  %v1153_v3 = vadd.f32 %v1152_v43, %v2039_v45 }
 0x31e   :  { %1227 = vst [vmem:[#allocation10 + $0x10] sm:$0xff] %v1151_v42 }
 0x31f   :  { %1228 = vst [vmem:[#allocation10 + $0x18] sm:$0xff] %v1153_v3 }
 0x321   :  { %v1156_v46 = vpop.f32.mrb[36].mxu0 }
 0x322   :  { %v1157_v48 = vadd.f32 %v1156_v46, %v2036_v1  ;;  %v1158_v4 = vpop.f32.mrb[37].mxu0 }
 0x323   :  { %v1159_v5 = vadd.f32 %v1158_v4, %v2039_v45  ;;  %v1160_v6 = vpop.f32.mrb[38].mxu0 }
 0x324   :  { %1229 = vst [vmem:[#allocation10 + $0x20] sm:$0xff] %v1157_v48  ;;  %v1161_v25 = vadd.f32 %v1160_v6, %v2036_v1  ;;  %v1162_v7 = vpop.f32.mrb[39].mxu0 }
 0x325   :  { %1230 = vst [vmem:[#allocation10 + $0x28] sm:$0xff] %v1159_v5  ;;  %v1163_v26 = vadd.f32 %v1162_v7, %v2039_v45 }
 0x326   :  { %1231 = vst [vmem:[#allocation10 + $0x30] sm:$0xff] %v1161_v25 }
 0x327   :  { %1232 = vst [vmem:[#allocation10 + $0x38] sm:$0xff] %v1163_v26 }
 0x329   :  { %v1166_v8 = vpop.f32.mrb[40].mxu0 }
 0x32a   :  { %v1167_v9 = vadd.f32 %v1166_v8, %v2036_v1  ;;  %v1168_v27 = vpop.f32.mrb[41].mxu0 }
 0x32b   :  { %v1169_v10 = vadd.f32 %v1168_v27, %v2039_v45  ;;  %v1170_v11 = vpop.f32.mrb[42].mxu0 }
 0x32c   :  { %1233 = vst [vmem:[#allocation10 + $0x40] sm:$0xff] %v1167_v9  ;;  %v1171_v28 = vadd.f32 %v1170_v11, %v2036_v1  ;;  %v1172_v12 = vpop.f32.mrb[43].mxu0 }
 0x32d   :  { %1234 = vst [vmem:[#allocation10 + $0x48] sm:$0xff] %v1169_v10  ;;  %v1173_v13 = vadd.f32 %v1172_v12, %v2039_v45 }
 0x32e   :  { %1235 = vst [vmem:[#allocation10 + $0x50] sm:$0xff] %v1171_v28 }
 0x32f   :  { %1236 = vst [vmem:[#allocation10 + $0x58] sm:$0xff] %v1173_v13 }
 0x331   :  { %v1176_v14 = vpop.f32.mrb[44].mxu0 }
 0x332   :  { %v1177_v15 = vadd.f32 %v1176_v14, %v2036_v1  ;;  %v1178_v17 = vpop.f32.mrb[45].mxu0 }
 0x333   :  { %v1179_v29 = vadd.f32 %v1178_v17, %v2039_v45  ;;  %v1180_v41 = vpop.f32.mrb[46].mxu0 }
 0x334   :  { %1237 = vst [vmem:[#allocation10 + $0x60] sm:$0xff] %v1177_v15  ;;  %v1181_v30 = vadd.f32 %v1180_v41, %v2036_v1  ;;  %v1182_v44 = vpop.f32.mrb[47].mxu0 }
 0x335   :  { %1238 = vst [vmem:[#allocation10 + $0x68] sm:$0xff] %v1179_v29  ;;  %v1183_v47 = vadd.f32 %v1182_v44, %v2039_v45 }
 0x336   :  { %1239 = vst [vmem:[#allocation10 + $0x70] sm:$0xff] %v1181_v30 }
 0x337   :  { %1240 = vst [vmem:[#allocation10 + $0x78] sm:$0xff] %v1183_v47 }
 0x339   :  { %v1186_v31 = vpop.f32.mrb[32].mxu1 }
 0x33a   :  { %v1187_v16 = vadd.f32 %v1186_v31, %v2036_v1  ;;  %v1188_v51 = vpop.f32.mrb[33].mxu1 }
 0x33b   :  { %v1189_v32 = vadd.f32 %v1188_v51, %v2039_v45  ;;  %v1190_v18 = vpop.f32.mrb[34].mxu1 }
 0x33c   :  { %1241 = vst [vmem:[#allocation10 + $0x80] sm:$0xff] %v1187_v16  ;;  %v1191_v52 = vadd.f32 %v1190_v18, %v2036_v1  ;;  %v1192_v53 = vpop.f32.mrb[35].mxu1 }
 0x33d   :  { %1242 = vst [vmem:[#allocation10 + $0x88] sm:$0xff] %v1189_v32  ;;  %v1193_v19 = vadd.f32 %v1192_v53, %v2039_v45 }
 0x33e   :  { %1243 = vst [vmem:[#allocation10 + $0x90] sm:$0xff] %v1191_v52 }
 0x33f   :  { %1244 = vst [vmem:[#allocation10 + $0x98] sm:$0xff] %v1193_v19 }
 0x341   :  { %v1196_v54 = vpop.f32.mrb[36].mxu1 }
 0x342   :  { %v1197_v33 = vadd.f32 %v1196_v54, %v2036_v1  ;;  %v1198_v55 = vpop.f32.mrb[37].mxu1 }
 0x343   :  { %v1199_v34 = vadd.f32 %v1198_v55, %v2039_v45  ;;  %v1200_v20 = vpop.f32.mrb[38].mxu1 }
 0x344   :  { %1245 = vst [vmem:[#allocation10 + $0xa0] sm:$0xff] %v1197_v33  ;;  %v1201_v56 = vadd.f32 %v1200_v20, %v2036_v1  ;;  %v1202_v35 = vpop.f32.mrb[39].mxu1 }
 0x345   :  { %1246 = vst [vmem:[#allocation10 + $0xa8] sm:$0xff] %v1199_v34  ;;  %v1203_v57 = vadd.f32 %v1202_v35, %v2039_v45 }
 0x346   :  { %1247 = vst [vmem:[#allocation10 + $0xb0] sm:$0xff] %v1201_v56 }
 0x347   :  { %1248 = vst [vmem:[#allocation10 + $0xb8] sm:$0xff] %v1203_v57 }
 0x349   :  { %v1206_v58 = vpop.f32.mrb[40].mxu1 }
 0x34a   :  { %v1207_v36 = vadd.f32 %v1206_v58, %v2036_v1  ;;  %v1208_v59 = vpop.f32.mrb[41].mxu1 }
 0x34b   :  { %v1209_v60 = vadd.f32 %v1208_v59, %v2039_v45  ;;  %v1210_v21 = vpop.f32.mrb[42].mxu1 }
 0x34c   :  { %1249 = vst [vmem:[#allocation10 + $0xc0] sm:$0xff] %v1207_v36  ;;  %v1211_v61 = vadd.f32 %v1210_v21, %v2036_v1  ;;  %v1212_v22 = vpop.f32.mrb[43].mxu1 }
 0x34d   :  { %1250 = vst [vmem:[#allocation10 + $0xc8] sm:$0xff] %v1209_v60  ;;  %v1213_v37 = vadd.f32 %v1212_v22, %v2039_v45 }
 0x34e   :  { %1251 = vst [vmem:[#allocation10 + $0xd0] sm:$0xff] %v1211_v61 }
 0x34f   :  { %1252 = vst [vmem:[#allocation10 + $0xd8] sm:$0xff] %v1213_v37 }
 0x351   :  { %v1216_v62 = vpop.f32.mrb[44].mxu1 }
 0x352   :  { %v1217_v38 = vadd.f32 %v1216_v62, %v2036_v1  ;;  %v1218_v63 = vpop.f32.mrb[45].mxu1 }
 0x353   :  { %v1219_v23 = vadd.f32 %v1218_v63, %v2039_v45  ;;  %v1220_v39 = vpop.f32.mrb[46].mxu1 }
 0x354   :  { %1253 = vst [vmem:[#allocation10 + $0xe0] sm:$0xff] %v1217_v38  ;;  %v1221_v0 = vadd.f32 %v1220_v39, %v2036_v1  ;;  %v1222_v40 = vpop.f32.mrb[47].mxu1 }
 0x355   :  { %1254 = vst [vmem:[#allocation10 + $0xe8] sm:$0xff] %v1219_v23  ;;  %v1223_v2 = vadd.f32 %v1222_v40, %v2039_v45 }
 0x356   :  { %1255 = vst [vmem:[#allocation10 + $0xf0] sm:$0xff] %v1221_v0 }
 0x357   :  { %1256 = vst [vmem:[#allocation10 + $0xf8] sm:$0xff] %v1223_v2 }
 0x358   :  { %1696 = shalt.err (!%p1693_p8)
}
 0x359   :  { %s1697_s9 = scalar_lea.hbm %s2092_s7, 4096 }
 0x35a   :  { %p1698_p9 = scmp.ne.s32.totalorder %s2092_s7, %s1697_s9  ;;  %p1701_p10 = scmp.lt.u32.totalorder %s1697_s9, %s2092_s7 }
 0x35c   :  { %p1703_p11 = pnand %p1701_p10, %p1698_p9 }
 0x35e   :  { %1706 = shalt.err (!%p1703_p11)
}
 0x35f   :  { %s1722_s16 = smov 256   ;;  %s1723_s0 = smov 16  }
 0x360   :  { %1268 = dma.vmem_to_hbm [thread:$0]  %s1263_s28, 4096, %s2092_s7, [#allocation4], %s1722_s16, %s1722_s16, %s1723_s0  }
 0x361   :  { %1713 = dma.done.wait [#allocation4], 4096  }
 0x362   :  { %1714 = vsyncadd [#allocation4], 4294963200 }
 0x363   :  { %1272 = vsyncpa [#allocation3], 1 }
 0x364   :  { %1273 = vsyncpa [#allocation6], 1 }
 0x365   :  { %1274 = vsyncpa [#allocation9], 1 }
 0x366   :  { %1275 = vsyncpa [#allocation4], 1 }

</bundles_post_ra>
